<compile_context>
chip_gen: v6e
topology: v6e:2x2x1
jax: 0.10.0
libtpu: 0.0.40
codegen_flags: <defaults>
</compile_context>

<pallas_src>
import functools

import jax
import jax.numpy as jnp
from jax import lax
from jax.experimental import pallas as pl
from jax.experimental.pallas import tpu as pltpu

LOGITS_SCALE = 4.6052   # self.logits_scale (multiplied directly, as in the spec)
# TODO(synk): args.temperature is external config; assume the CLIP-style 0.07.
TEMPERATURE = 0.07
INV_TEMP = 1.0 / TEMPERATURE
EPS = 1e-12             # F.normalize eps
NEG_BIG = -1e30         # mask value for padded class columns
LANE = 128
SUBLANE_ALIGN = 16      # covers bf16 sublane packing


def _round_up(x, m):
    return (x + m - 1) // m * m


def _vmem_limit_bytes():
    # v5e/v6e: 128 MiB physical VMEM -> ~96-100 MiB budget; v7x: 64 MiB -> 48 MiB.
    try:
        cap = int(pltpu.get_tpu_info().vmem_capacity_bytes)
    except Exception:
        cap = 64 * 1024 * 1024          # conservative (v7x-sized) fallback
    return min(100 * 1024 * 1024, (cap * 3) // 4)


def _sbir_kernel(feats_ref, labels_ref, w1_ref, w2_ref, text_ref,
                 logits_ref, loss_ref, *, num_classes):
    tb = feats_ref.shape[0]          # batch tile
    c_pad = text_ref.shape[1]        # padded class count (multiple of 128)

    # adapter: Linear(H, H//4, bias=False) -> ReLU -> Linear(H//4, 768, bias=False)
    # bf16 MXU operands, f32 accumulation; elementwise work stays f32.
    x = feats_ref[...]                                               # (tb, H) bf16
    h = jnp.dot(x, w1_ref[...], preferred_element_type=jnp.float32)  # (tb, H//4) f32
    h = jnp.maximum(h, 0.0)                                          # ReLU
    f = jnp.dot(h.astype(jnp.bfloat16), w2_ref[...],
                preferred_element_type=jnp.float32)                  # (tb, 768) f32

    # F.normalize(features, dim=-1) fused with logits_scale:
    #   x / max(||x||, eps) * LS == x * (rsqrt(max(||x||^2, eps^2)) * LS)
    # Folding LS here removes a full (tb, c_pad) multiply after the class matmul.
    inv_norm = lax.rsqrt(jnp.maximum(jnp.sum(f * f, axis=-1, keepdims=True),
                                     EPS * EPS)) * LOGITS_SCALE      # (tb, 1)
    f = f * inv_norm

    # pre_logits = normalize(features) @ text_features.T * logits_scale
    # (scale already folded into f).  Store lane-dense bf16.
    logits = jnp.dot(f.astype(jnp.bfloat16), text_ref[...],
                     preferred_element_type=jnp.float32)             # (tb, c_pad) f32
    logits_ref[...] = logits.astype(logits_ref.dtype)

    # CrossEntropyLoss(pre_logits / temperature, labels) -> per-tile partial sum.
    # Loss math stays on the f32 logits.  Padded batch rows carry label = -1.
    labels = labels_ref[...]                                         # (tb, 1) int32
    scaled = logits * INV_TEMP                                       # one multiply
    col = lax.broadcasted_iota(jnp.int32, (tb, c_pad), 1)
    if c_pad != num_classes:          # static: skip mask when C is lane-aligned
        scaled = jnp.where(col < num_classes, scaled, NEG_BIG)
    m = jnp.max(scaled, axis=-1, keepdims=True)
    lse = jnp.log(jnp.sum(jnp.exp(scaled - m), axis=-1, keepdims=True)) + m
    # loss = sum_valid(lse) - sum(scaled[label]); no (tb, c_pad) logp temporary.
    picked = jnp.sum(jnp.where(col == labels, scaled, 0.0))
    lse_sum = jnp.sum(jnp.where(labels >= 0, lse, 0.0))              # mask padded rows
    tile_loss = lse_sum - picked
    loss_ref[...] = jnp.broadcast_to(tile_loss.reshape(1, 1, 1), loss_ref.shape)


def prepare_sbir_constants(w1, w2, text_features):
    """Per-call-invariant prep, hoisted out of the forward path (pay once).

    w1: (H, H//4), w2: (H//4, 768) already transposed to (in, out) layout;
    text_features: (C, 768) L2-normalized.
    Returns bf16 weights and the transposed, class-padded text matrix.
    """
    C, EMB = text_features.shape
    C_pad = _round_up(C, LANE)
    w1_b = w1.astype(jnp.bfloat16)
    w2_b = w2.astype(jnp.bfloat16)
    text_t = jnp.zeros((EMB, C_pad), jnp.bfloat16).at[:, :C].set(
        text_features.T.astype(jnp.bfloat16))
    # TODO(synk): on v7x with very large C, store text_t in fp8 (e4m3) and/or
    # tile the class axis; not needed at these shapes.
    return w1_b, w2_b, text_t


def sbir_forward(feats, labels, w1_b, w2_b, text_t, num_classes, *,
                 max_tile_b=256):
    """feats: (B, H) backbone features; constants from prepare_sbir_constants."""
    B, H = feats.shape
    C = num_classes
    C_pad = text_t.shape[1]

    # Batch tiling: sublane-aligned tiles; ensure >= 2 tiles when the batch
    # allows it so the "parallel" grid axis can feed both v7x TensorCores.
    B_align = _round_up(B, SUBLANE_ALIGN)
    TB = min(_round_up(max_tile_b, SUBLANE_ALIGN), B_align)
    if B_align > SUBLANE_ALIGN and B_align // TB < 2:
        TB = _round_up(-(-B_align // 2), SUBLANE_ALIGN)
    B_pad = _round_up(B, TB)
    n_tiles = B_pad // TB

    # Glue: pad + cast matmul operands to bf16 (halves HBM traffic, MXU-native).
    feats_p = jnp.zeros((B_pad, H), jnp.bfloat16).at[:B].set(
        feats.astype(jnp.bfloat16))
    labels_p = jnp.full((B_pad, 1), -1, jnp.int32).at[:B, 0].set(
        labels.astype(jnp.int32))

    kernel = functools.partial(_sbir_kernel, num_classes=C)

    def _call(single_buffer_residents):
        resident_kw = ({"pipeline_mode": pl.Buffered(buffer_count=1)}
                       if single_buffer_residents else {})
        return pl.pallas_call(
            kernel,
            grid=(n_tiles,),
            in_specs=[
                pl.BlockSpec((TB, H), lambda i: (i, 0)),            # feats stream
                pl.BlockSpec((TB, 1), lambda i: (i, 0)),            # labels stream
                pl.BlockSpec(w1_b.shape, lambda i: (0, 0), **resident_kw),
                pl.BlockSpec(w2_b.shape, lambda i: (0, 0), **resident_kw),
                pl.BlockSpec(text_t.shape, lambda i: (0, 0), **resident_kw),
            ],
            out_specs=[
                pl.BlockSpec((TB, C_pad), lambda i: (i, 0)),        # bf16 logits
                pl.BlockSpec((1, 8, LANE), lambda i: (i, 0, 0)),    # loss partial
            ],
            out_shape=(
                jax.ShapeDtypeStruct((B_pad, C_pad), jnp.bfloat16),
                jax.ShapeDtypeStruct((n_tiles, 8, LANE), jnp.float32),
            ),
            compiler_params=pltpu.CompilerParams(
                # No cross-tile carry -> batch axis is parallel (both TCs on v7x).
                dimension_semantics=("parallel",),
                # Generation-aware budget (96 MiB on v5e/v6e, 48 MiB on v7x).
                vmem_limit_bytes=_vmem_limit_bytes(),
            ),
        )(feats_p, labels_p, w1_b, w2_b, text_t)

    try:
        logits_pad, loss_tiles = _call(True)
    except Exception:
        # TODO(synk): jax build without BlockSpec.pipeline_mode support;
        # fall back to default double-buffered resident operands.
        logits_pad, loss_tiles = _call(False)

    pre_logits = logits_pad[:B, :C].astype(jnp.float32)
    loss_ce = loss_tiles[:, 0, 0].sum() / B            # divide by true B, not padded
    return pre_logits, {"ce": loss_ce, "total": loss_ce}


if __name__ == "__main__":
    # Small shapes consistent with the module's forward.
    B, Cin, Hs, Ws = 2, 4, 16, 16          # inputs: NCHW images
    HIDDEN = 32                            # feature_extractor.hidden_dim
    RED = 4                                # reduction
    EMB = 768                              # adapter output / CLIP text dim
    NUM_CLASSES = 16                       # number of text prompts / classes

    key = jax.random.PRNGKey(0)
    k_in, k_ext, k_w1, k_w2, k_txt, k_lab = jax.random.split(key, 6)

    inputs = jax.random.normal(k_in, (B, Cin, Hs, Ws), dtype=jnp.float32)

    # TODO(synk): BaseExtractor (frozen CLIP-like backbone) is external to this
    # module; stand in with a deterministic linear projection of the flattened
    # NCHW image to (B, HIDDEN).
    w_ext = jax.random.normal(k_ext, (Cin * Hs * Ws, HIDDEN),
                              dtype=jnp.float32) * 0.02
    feats = inputs.reshape(B, -1) @ w_ext                      # (B, HIDDEN)

    # Adapter weights (nn.Linear stores weight as (out, in); pass transposed).
    w1 = (jax.random.normal(k_w1, (HIDDEN // RED, HIDDEN),
                            dtype=jnp.float32) * 0.05).T        # (H, H//4)
    w2 = (jax.random.normal(k_w2, (EMB, HIDDEN // RED),
                            dtype=jnp.float32) * 0.05).T        # (H//4, 768)

    # TODO(synk): text_features normally come from CLIP encode_text; use
    # deterministic random embeddings, L2-normalized as in get_global_text_embedding.
    text_raw = jax.random.normal(k_txt, (NUM_CLASSES, EMB), dtype=jnp.float32)
    text_features = text_raw / jnp.linalg.norm(text_raw, axis=-1, keepdims=True)

    labels = jax.random.randint(k_lab, (B,), 0, NUM_CLASSES, dtype=jnp.int32)

    # NOTE: self.head = nn.Linear(hidden_dim, num_classes) is defined in
    # __init__ but never used in forward(), so it is intentionally omitted.

    # Constant-operand prep hoisted out of the per-call path (pay once).
    w1_b, w2_b, text_t = prepare_sbir_constants(w1, w2, text_features)

    pre_logits, losses = sbir_forward(feats, labels, w1_b, w2_b, text_t,
                                      NUM_CLASSES)
    jax.block_until_ready((pre_logits, losses["total"]))

    # Pure-JAX reference mirroring the kernel's dtype policy (bf16 MXU operands,
    # f32 accumulation, logits_scale folded into the normalized features).
    fb = feats.astype(jnp.bfloat16)
    h_ref = jnp.maximum(
        jnp.dot(fb, w1_b, preferred_element_type=jnp.float32), 0.0)
    f_ref = jnp.dot(h_ref.astype(jnp.bfloat16), w2_b,
                    preferred_element_type=jnp.float32)
    inv_ref = lax.rsqrt(jnp.maximum(
        jnp.sum(f_ref * f_ref, axis=-1, keepdims=True), EPS * EPS))
    f_ref = f_ref * (inv_ref * LOGITS_SCALE)
    logits_expected = jnp.dot(f_ref.astype(jnp.bfloat16),
                              text_t[:, :NUM_CLASSES],
                              preferred_element_type=jnp.float32)
    logp_expected = jax.nn.log_softmax(logits_expected / TEMPERATURE, axis=-1)
    loss_expected = -jnp.mean(jnp.take_along_axis(
        logp_expected, labels[:, None], axis=-1))

    assert pre_logits.shape == (B, NUM_CLASSES)
    # pre_logits are stored bf16 in the kernel -> slightly looser tolerance.
    assert jnp.allclose(pre_logits, logits_expected, atol=2e-2, rtol=2e-2)
    assert jnp.allclose(losses["ce"], loss_expected, atol=1e-2, rtol=1e-2)

    print("KERNEL_OK")
</pallas_src>

<mosaic_0001>
module attributes {stable_mosaic.version = 11 : i64} {
  func.func @_sbir_kernel(%arg0: i32, %arg1: memref<16x32xbf16, #tpu.memory_space<vmem>>, %arg2: memref<16x1xi32, #tpu.memory_space<vmem>>, %arg3: memref<32x8xbf16, #tpu.memory_space<vmem>>, %arg4: memref<8x768xbf16, #tpu.memory_space<vmem>>, %arg5: memref<768x128xbf16, #tpu.memory_space<vmem>>, %arg6: memref<16x128xbf16, #tpu.memory_space<vmem>>, %arg7: memref<1x8x128xf32, #tpu.memory_space<vmem>>) attributes {dimension_semantics = [#tpu.dimension_semantics<parallel>], iteration_bounds = array<i64: 1>, scalar_prefetch = 0 : i64, scratch_operands = 0 : i64, tpu.core_type = #tpu.core_type<tc>, window_params = [{transform_indices = @transform_0, window_bounds = array<i64: 16, 32>}, {transform_indices = @transform_1, window_bounds = array<i64: 16, 1>}, {pipeline_mode = #tpu.pipeline_mode<synchronous>, transform_indices = @transform_2, window_bounds = array<i64: 32, 8>}, {pipeline_mode = #tpu.pipeline_mode<synchronous>, transform_indices = @transform_3, window_bounds = array<i64: 8, 768>}, {pipeline_mode = #tpu.pipeline_mode<synchronous>, transform_indices = @transform_4, window_bounds = array<i64: 768, 128>}, {transform_indices = @transform_5, window_bounds = array<i64: 16, 128>}, {transform_indices = @transform_6, window_bounds = array<i64: 1, 8, 128>}]} {
    %c0 = arith.constant 0 : index
    %c0_0 = arith.constant 0 : index
    %0 = vector.load %arg1[%c0, %c0_0] : memref<16x32xbf16, #tpu.memory_space<vmem>>, vector<16x32xbf16>
    %c0_1 = arith.constant 0 : index
    %c0_2 = arith.constant 0 : index
    %1 = vector.load %arg3[%c0_1, %c0_2] : memref<32x8xbf16, #tpu.memory_space<vmem>>, vector<32x8xbf16>
    %cst = arith.constant dense<0.000000e+00> : vector<16x8xf32>
    %2 = tpu.matmul %0, %1, %cst {dimension_numbers = #tpu.dot_dimension_numbers<[1], [0], [0], [1], [0, 0, 1, 1], [], []>} : vector<16x32xbf16>, vector<32x8xbf16>, vector<16x8xf32> -> vector<16x8xf32>
    %cst_3 = arith.constant 0.000000e+00 : f32
    %3 = vector.broadcast %cst_3 : f32 to vector<16x8xf32>
    %4 = arith.maximumf %2, %3 : vector<16x8xf32>
    %5 = arith.truncf %4 : vector<16x8xf32> to vector<16x8xbf16>
    %c0_4 = arith.constant 0 : index
    %c0_5 = arith.constant 0 : index
    %6 = vector.load %arg4[%c0_4, %c0_5] : memref<8x768xbf16, #tpu.memory_space<vmem>>, vector<8x768xbf16>
    %cst_6 = arith.constant dense<0.000000e+00> : vector<16x768xf32>
    %7 = tpu.matmul %5, %6, %cst_6 {dimension_numbers = #tpu.dot_dimension_numbers<[1], [0], [0], [1], [0, 0, 1, 1], [], []>} : vector<16x8xbf16>, vector<8x768xbf16>, vector<16x768xf32> -> vector<16x768xf32>
    %8 = arith.mulf %7, %7 : vector<16x768xf32>
    %cst_7 = arith.constant dense<0.000000e+00> : vector<16xf32>
    %9 = vector.multi_reduction <add>, %8, %cst_7 [1] : vector<16x768xf32> to vector<16xf32>
    %10 = vector.shape_cast %9 : vector<16xf32> to vector<16x1xf32>
    %cst_8 = arith.constant 1.000000e-24 : f32
    %11 = vector.broadcast %cst_8 : f32 to vector<16x1xf32>
    %12 = arith.maximumf %10, %11 : vector<16x1xf32>
    %13 = math.rsqrt %12 : vector<16x1xf32>
    %cst_9 = arith.constant 4.605200e+00 : f32
    %14 = vector.broadcast %cst_9 : f32 to vector<16x1xf32>
    %15 = arith.mulf %13, %14 : vector<16x1xf32>
    %16 = vector.broadcast %15 : vector<16x1xf32> to vector<16x768xf32>
    %17 = arith.mulf %7, %16 : vector<16x768xf32>
    %18 = arith.truncf %17 : vector<16x768xf32> to vector<16x768xbf16>
    %c0_10 = arith.constant 0 : index
    %c0_11 = arith.constant 0 : index
    %19 = vector.load %arg5[%c0_10, %c0_11] : memref<768x128xbf16, #tpu.memory_space<vmem>>, vector<768x128xbf16>
    %cst_12 = arith.constant dense<0.000000e+00> : vector<16x128xf32>
    %20 = tpu.matmul %18, %19, %cst_12 {dimension_numbers = #tpu.dot_dimension_numbers<[1], [0], [0], [1], [0, 0, 1, 1], [], []>} : vector<16x768xbf16>, vector<768x128xbf16>, vector<16x128xf32> -> vector<16x128xf32>
    %21 = arith.truncf %20 : vector<16x128xf32> to vector<16x128xbf16>
    %c0_13 = arith.constant 0 : index
    %c0_14 = arith.constant 0 : index
    %22 = vector.load %arg6[%c0_13, %c0_14] : memref<16x128xbf16, #tpu.memory_space<vmem>>, vector<16x128xbf16>
    tpu.vector_store %arg6[%c0_13, %c0_14], %21 {strides = array<i32>} : memref<16x128xbf16, #tpu.memory_space<vmem>>, vector<16x128xbf16>,
    %c0_15 = arith.constant 0 : index
    %c0_16 = arith.constant 0 : index
    %23 = vector.load %arg2[%c0_15, %c0_16] : memref<16x1xi32, #tpu.memory_space<vmem>>, vector<16x1xi32>
    %cst_17 = arith.constant 14.2857141 : f32
    %24 = vector.broadcast %cst_17 : f32 to vector<16x128xf32>
    %25 = arith.mulf %20, %24 : vector<16x128xf32>
    %26 = tpu.iota {dimensions = array<i32: 1>} : vector<16x128xi32>
    %c16_i32 = arith.constant 16 : i32
    %27 = vector.broadcast %c16_i32 : i32 to vector<16x128xi32>
    %28 = arith.cmpi slt, %26, %27 : vector<16x128xi32>
    %cst_18 = arith.constant -1.000000e+30 : f32
    %29 = vector.broadcast %cst_18 : f32 to vector<16x128xf32>
    %30 = arith.select %28, %25, %29 : vector<16x128xi1>, vector<16x128xf32>
    %cst_19 = arith.constant dense<0xFF800000> : vector<16xf32>
    %31 = vector.multi_reduction <maximumf>, %30, %cst_19 [1] : vector<16x128xf32> to vector<16xf32>
    %32 = vector.shape_cast %31 : vector<16xf32> to vector<16x1xf32>
    %33 = vector.broadcast %32 : vector<16x1xf32> to vector<16x128xf32>
    %34 = arith.subf %30, %33 : vector<16x128xf32>
    %35 = math.exp %34 : vector<16x128xf32>
    %cst_20 = arith.constant dense<0.000000e+00> : vector<16xf32>
    %36 = vector.multi_reduction <add>, %35, %cst_20 [1] : vector<16x128xf32> to vector<16xf32>
    %37 = vector.shape_cast %36 : vector<16xf32> to vector<16x1xf32>
    %38 = math.log %37 : vector<16x1xf32>
    %39 = arith.addf %38, %32 : vector<16x1xf32>
    %40 = vector.broadcast %23 : vector<16x1xi32> to vector<16x128xi32>
    %41 = arith.cmpi eq, %26, %40 : vector<16x128xi32>
    %cst_21 = arith.constant 0.000000e+00 : f32
    %42 = vector.broadcast %cst_21 : f32 to vector<16x128xf32>
    %43 = arith.select %41, %30, %42 : vector<16x128xi1>, vector<16x128xf32>
    %44 = vector.shape_cast %43 : vector<16x128xf32> to vector<1x16x128xf32>
    %cst_22 = arith.constant dense<0.000000e+00> : vector<1xf32>
    %45 = vector.multi_reduction <add>, %44, %cst_22 [1, 2] : vector<1x16x128xf32> to vector<1xf32>
    %46 = vector.shape_cast %45 : vector<1xf32> to vector<1x1x1xf32>
    %47 = vector.extract %46[0, 0, 0] : f32 from vector<1x1x1xf32>
    %c0_i32 = arith.constant 0 : i32
    %48 = vector.broadcast %c0_i32 : i32 to vector<16x1xi32>
    %49 = arith.cmpi sge, %23, %48 : vector<16x1xi32>
    %cst_23 = arith.constant 0.000000e+00 : f32
    %50 = vector.broadcast %cst_23 : f32 to vector<16x1xf32>
    %51 = arith.select %49, %39, %50 : vector<16x1xi1>, vector<16x1xf32>
    %52 = vector.shape_cast %51 : vector<16x1xf32> to vector<1x16x1xf32>
    %cst_24 = arith.constant dense<0.000000e+00> : vector<1xf32>
    %53 = vector.multi_reduction <add>, %52, %cst_24 [1, 2] : vector<1x16x1xf32> to vector<1xf32>
    %54 = vector.shape_cast %53 : vector<1xf32> to vector<1x1x1xf32>
    %55 = vector.extract %54[0, 0, 0] : f32 from vector<1x1x1xf32>
    %56 = arith.subf %55, %47 : f32
    %57 = vector.broadcast %56 : f32 to vector<1x1x1xf32>
    %58 = vector.shape_cast %57 : vector<1x1x1xf32> to vector<1x1x1xf32>
    %59 = vector.broadcast %58 : vector<1x1x1xf32> to vector<1x8x128xf32>
    %c0_25 = arith.constant 0 : index
    %c0_26 = arith.constant 0 : index
    %c0_27 = arith.constant 0 : index
    %60 = vector.load %arg7[%c0_25, %c0_26, %c0_27] : memref<1x8x128xf32, #tpu.memory_space<vmem>>, vector<1x8x128xf32>
    tpu.vector_store %arg7[%c0_25, %c0_26, %c0_27], %59 {strides = array<i32>} : memref<1x8x128xf32, #tpu.memory_space<vmem>>, vector<1x8x128xf32>,
    return
  }
  func.func @transform_0(%arg0: i32) -> (i32, i32) {
    %c0_i32 = arith.constant 0 : i32
    %c0_i32_0 = arith.constant 0 : i32
    return %arg0, %c0_i32 : i32, i32
  }
  func.func @transform_1(%arg0: i32) -> (i32, i32) {
    %c0_i32 = arith.constant 0 : i32
    %c0_i32_0 = arith.constant 0 : i32
    return %arg0, %c0_i32 : i32, i32
  }
  func.func @transform_2(%arg0: i32) -> (i32, i32) {
    %c0_i32 = arith.constant 0 : i32
    %c0_i32_0 = arith.constant 0 : i32
    %c0_i32_1 = arith.constant 0 : i32
    return %c0_i32, %c0_i32_0 : i32, i32
  }
  func.func @transform_3(%arg0: i32) -> (i32, i32) {
    %c0_i32 = arith.constant 0 : i32
    %c0_i32_0 = arith.constant 0 : i32
    %c0_i32_1 = arith.constant 0 : i32
    return %c0_i32, %c0_i32_0 : i32, i32
  }
  func.func @transform_4(%arg0: i32) -> (i32, i32) {
    %c0_i32 = arith.constant 0 : i32
    %c0_i32_0 = arith.constant 0 : i32
    %c0_i32_1 = arith.constant 0 : i32
    return %c0_i32, %c0_i32_0 : i32, i32
  }
  func.func @transform_5(%arg0: i32) -> (i32, i32) {
    %c0_i32 = arith.constant 0 : i32
    %c0_i32_0 = arith.constant 0 : i32
    return %arg0, %c0_i32 : i32, i32
  }
  func.func @transform_6(%arg0: i32) -> (i32, i32, i32) {
    %c0_i32 = arith.constant 0 : i32
    %c0_i32_0 = arith.constant 0 : i32
    %c0_i32_1 = arith.constant 0 : i32
    return %arg0, %c0_i32, %c0_i32_0 : i32, i32, i32
  }
}

module attributes {stable_mosaic.version = 11 : i64} {
  func.func @_sbir_kernel(%arg0: i32, %arg1: memref<16x32xbf16, #tpu.memory_space<vmem>>, %arg2: memref<16x1xi32, #tpu.memory_space<vmem>>, %arg3: memref<32x8xbf16, #tpu.memory_space<vmem>>, %arg4: memref<8x768xbf16, #tpu.memory_space<vmem>>, %arg5: memref<768x128xbf16, #tpu.memory_space<vmem>>, %arg6: memref<16x128xbf16, #tpu.memory_space<vmem>>, %arg7: memref<1x8x128xf32, #tpu.memory_space<vmem>>) attributes {dimension_semantics = [#tpu.dimension_semantics<parallel>], iteration_bounds = array<i64: 1>, scalar_prefetch = 0 : i64, scratch_operands = 0 : i64, tpu.core_type = #tpu.core_type<tc>, window_params = [{transform_indices = @transform_0, window_bounds = array<i64: 16, 32>}, {transform_indices = @transform_1, window_bounds = array<i64: 16, 1>}, {pipeline_mode = #tpu.pipeline_mode<synchronous>, transform_indices = @transform_2, window_bounds = array<i64: 32, 8>}, {pipeline_mode = #tpu.pipeline_mode<synchronous>, transform_indices = @transform_3, window_bounds = array<i64: 8, 768>}, {pipeline_mode = #tpu.pipeline_mode<synchronous>, transform_indices = @transform_4, window_bounds = array<i64: 768, 128>}, {transform_indices = @transform_5, window_bounds = array<i64: 16, 128>}, {transform_indices = @transform_6, window_bounds = array<i64: 1, 8, 128>}]} {
    %c0 = arith.constant 0 : index
    %c0_0 = arith.constant 0 : index
    %0 = vector.load %arg1[%c0, %c0_0] : memref<16x32xbf16, #tpu.memory_space<vmem>>, vector<16x32xbf16>
    %c0_1 = arith.constant 0 : index
    %c0_2 = arith.constant 0 : index
    %1 = vector.load %arg3[%c0_1, %c0_2] : memref<32x8xbf16, #tpu.memory_space<vmem>>, vector<32x8xbf16>
    %cst = arith.constant dense<0.000000e+00> : vector<16x8xf32>
    %2 = tpu.matmul %0, %1, %cst {dimension_numbers = #tpu.dot_dimension_numbers<[1], [0], [0], [1], [0, 0, 1, 1], [], []>} : vector<16x32xbf16>, vector<32x8xbf16>, vector<16x8xf32> -> vector<16x8xf32>
    %cst_3 = arith.constant 0.000000e+00 : f32
    %3 = vector.broadcast %cst_3 : f32 to vector<16x8xf32>
    %4 = arith.maximumf %2, %3 : vector<16x8xf32>
    %5 = arith.truncf %4 : vector<16x8xf32> to vector<16x8xbf16>
    %c0_4 = arith.constant 0 : index
    %c0_5 = arith.constant 0 : index
    %6 = vector.load %arg4[%c0_4, %c0_5] : memref<8x768xbf16, #tpu.memory_space<vmem>>, vector<8x768xbf16>
    %cst_6 = arith.constant dense<0.000000e+00> : vector<16x768xf32>
    %7 = tpu.matmul %5, %6, %cst_6 {dimension_numbers = #tpu.dot_dimension_numbers<[1], [0], [0], [1], [0, 0, 1, 1], [], []>} : vector<16x8xbf16>, vector<8x768xbf16>, vector<16x768xf32> -> vector<16x768xf32>
    %8 = arith.mulf %7, %7 : vector<16x768xf32>
    %cst_7 = arith.constant dense<0.000000e+00> : vector<16xf32>
    %9 = vector.multi_reduction <add>, %8, %cst_7 [1] : vector<16x768xf32> to vector<16xf32>
    %10 = vector.shape_cast %9 : vector<16xf32> to vector<16x1xf32>
    %cst_8 = arith.constant 1.000000e-24 : f32
    %11 = vector.broadcast %cst_8 : f32 to vector<16x1xf32>
    %12 = arith.maximumf %10, %11 : vector<16x1xf32>
    %13 = math.rsqrt %12 : vector<16x1xf32>
    %cst_9 = arith.constant 4.605200e+00 : f32
    %14 = vector.broadcast %cst_9 : f32 to vector<16x1xf32>
    %15 = arith.mulf %13, %14 : vector<16x1xf32>
    %16 = vector.broadcast %15 : vector<16x1xf32> to vector<16x768xf32>
    %17 = arith.mulf %7, %16 : vector<16x768xf32>
    %18 = arith.truncf %17 : vector<16x768xf32> to vector<16x768xbf16>
    %c0_10 = arith.constant 0 : index
    %c0_11 = arith.constant 0 : index
    %19 = vector.load %arg5[%c0_10, %c0_11] : memref<768x128xbf16, #tpu.memory_space<vmem>>, vector<768x128xbf16>
    %cst_12 = arith.constant dense<0.000000e+00> : vector<16x128xf32>
    %20 = tpu.matmul %18, %19, %cst_12 {dimension_numbers = #tpu.dot_dimension_numbers<[1], [0], [0], [1], [0, 0, 1, 1], [], []>} : vector<16x768xbf16>, vector<768x128xbf16>, vector<16x128xf32> -> vector<16x128xf32>
    %21 = arith.truncf %20 : vector<16x128xf32> to vector<16x128xbf16>
    %c0_13 = arith.constant 0 : index
    %c0_14 = arith.constant 0 : index
    %22 = vector.load %arg6[%c0_13, %c0_14] : memref<16x128xbf16, #tpu.memory_space<vmem>>, vector<16x128xbf16>
    tpu.vector_store %arg6[%c0_13, %c0_14], %21 {strides = array<i32>} : memref<16x128xbf16, #tpu.memory_space<vmem>>, vector<16x128xbf16>,
    %c0_15 = arith.constant 0 : index
    %c0_16 = arith.constant 0 : index
    %23 = vector.load %arg2[%c0_15, %c0_16] : memref<16x1xi32, #tpu.memory_space<vmem>>, vector<16x1xi32>
    %cst_17 = arith.constant 14.2857141 : f32
    %24 = vector.broadcast %cst_17 : f32 to vector<16x128xf32>
    %25 = arith.mulf %20, %24 : vector<16x128xf32>
    %26 = tpu.iota {dimensions = array<i32: 1>} : vector<16x128xi32>
    %c16_i32 = arith.constant 16 : i32
    %27 = vector.broadcast %c16_i32 : i32 to vector<16x128xi32>
    %28 = arith.cmpi slt, %26, %27 : vector<16x128xi32>
    %cst_18 = arith.constant -1.000000e+30 : f32
    %29 = vector.broadcast %cst_18 : f32 to vector<16x128xf32>
    %30 = arith.select %28, %25, %29 : vector<16x128xi1>, vector<16x128xf32>
    %cst_19 = arith.constant dense<0xFF800000> : vector<16xf32>
    %31 = vector.multi_reduction <maximumf>, %30, %cst_19 [1] : vector<16x128xf32> to vector<16xf32>
    %32 = vector.shape_cast %31 : vector<16xf32> to vector<16x1xf32>
    %33 = vector.broadcast %32 : vector<16x1xf32> to vector<16x128xf32>
    %34 = arith.subf %30, %33 : vector<16x128xf32>
    %35 = math.exp %34 : vector<16x128xf32>
    %cst_20 = arith.constant dense<0.000000e+00> : vector<16xf32>
    %36 = vector.multi_reduction <add>, %35, %cst_20 [1] : vector<16x128xf32> to vector<16xf32>
    %37 = vector.shape_cast %36 : vector<16xf32> to vector<16x1xf32>
    %38 = math.log %37 : vector<16x1xf32>
    %39 = arith.addf %38, %32 : vector<16x1xf32>
    %40 = vector.broadcast %23 : vector<16x1xi32> to vector<16x128xi32>
    %41 = arith.cmpi eq, %26, %40 : vector<16x128xi32>
    %cst_21 = arith.constant 0.000000e+00 : f32
    %42 = vector.broadcast %cst_21 : f32 to vector<16x128xf32>
    %43 = arith.select %41, %30, %42 : vector<16x128xi1>, vector<16x128xf32>
    %44 = vector.shape_cast %43 : vector<16x128xf32> to vector<1x16x128xf32>
    %cst_22 = arith.constant dense<0.000000e+00> : vector<1xf32>
    %45 = vector.multi_reduction <add>, %44, %cst_22 [1, 2] : vector<1x16x128xf32> to vector<1xf32>
    %46 = vector.shape_cast %45 : vector<1xf32> to vector<1x1x1xf32>
    %47 = vector.extract %46[0, 0, 0] : f32 from vector<1x1x1xf32>
    %c0_i32 = arith.constant 0 : i32
    %48 = vector.broadcast %c0_i32 : i32 to vector<16x1xi32>
    %49 = arith.cmpi sge, %23, %48 : vector<16x1xi32>
    %cst_23 = arith.constant 0.000000e+00 : f32
    %50 = vector.broadcast %cst_23 : f32 to vector<16x1xf32>
    %51 = arith.select %49, %39, %50 : vector<16x1xi1>, vector<16x1xf32>
    %52 = vector.shape_cast %51 : vector<16x1xf32> to vector<1x16x1xf32>
    %cst_24 = arith.constant dense<0.000000e+00> : vector<1xf32>
    %53 = vector.multi_reduction <add>, %52, %cst_24 [1, 2] : vector<1x16x1xf32> to vector<1xf32>
    %54 = vector.shape_cast %53 : vector<1xf32> to vector<1x1x1xf32>
    %55 = vector.extract %54[0, 0, 0] : f32 from vector<1x1x1xf32>
    %56 = arith.subf %55, %47 : f32
    %57 = vector.broadcast %56 : f32 to vector<1x1x1xf32>
    %58 = vector.shape_cast %57 : vector<1x1x1xf32> to vector<1x1x1xf32>
    %59 = vector.broadcast %58 : vector<1x1x1xf32> to vector<1x8x128xf32>
    %c0_25 = arith.constant 0 : index
    %c0_26 = arith.constant 0 : index
    %c0_27 = arith.constant 0 : index
    %60 = vector.load %arg7[%c0_25, %c0_26, %c0_27] : memref<1x8x128xf32, #tpu.memory_space<vmem>>, vector<1x8x128xf32>
    tpu.vector_store %arg7[%c0_25, %c0_26, %c0_27], %59 {strides = array<i32>} : memref<1x8x128xf32, #tpu.memory_space<vmem>>, vector<1x8x128xf32>,
    return
  }
  func.func @transform_0(%arg0: i32) -> (i32, i32) {
    %c0_i32 = arith.constant 0 : i32
    %c0_i32_0 = arith.constant 0 : i32
    return %arg0, %c0_i32 : i32, i32
  }
  func.func @transform_1(%arg0: i32) -> (i32, i32) {
    %c0_i32 = arith.constant 0 : i32
    %c0_i32_0 = arith.constant 0 : i32
    return %arg0, %c0_i32 : i32, i32
  }
  func.func @transform_2(%arg0: i32) -> (i32, i32) {
    %c0_i32 = arith.constant 0 : i32
    %c0_i32_0 = arith.constant 0 : i32
    %c0_i32_1 = arith.constant 0 : i32
    return %c0_i32, %c0_i32_0 : i32, i32
  }
  func.func @transform_3(%arg0: i32) -> (i32, i32) {
    %c0_i32 = arith.constant 0 : i32
    %c0_i32_0 = arith.constant 0 : i32
    %c0_i32_1 = arith.constant 0 : i32
    return %c0_i32, %c0_i32_0 : i32, i32
  }
  func.func @transform_4(%arg0: i32) -> (i32, i32) {
    %c0_i32 = arith.constant 0 : i32
    %c0_i32_0 = arith.constant 0 : i32
    %c0_i32_1 = arith.constant 0 : i32
    return %c0_i32, %c0_i32_0 : i32, i32
  }
  func.func @transform_5(%arg0: i32) -> (i32, i32) {
    %c0_i32 = arith.constant 0 : i32
    %c0_i32_0 = arith.constant 0 : i32
    return %arg0, %c0_i32 : i32, i32
  }
  func.func @transform_6(%arg0: i32) -> (i32, i32, i32) {
    %c0_i32 = arith.constant 0 : i32
    %c0_i32_0 = arith.constant 0 : i32
    %c0_i32_1 = arith.constant 0 : i32
    return %arg0, %c0_i32, %c0_i32_0 : i32, i32, i32
  }
}

</mosaic_0001>

<bundles_post_ra>
// kernel: tpu_custom_call.1
= control target key start
LH: loop header
LB: loop body
LE: loop exit
PB: predicated region body
PF: predicated region fallthrough
CT: control target
= control target key end

     0   :  { %12 = vsyncpa [#allocation3], 0  ;;  %s1394_s0 = inlined_call_operand.vmem [shape: bf16[16,32], index: 0, kind: input, shape index: {}]   ;;  %s1395_s1 = inlined_call_operand.vmem [shape: s32[16,1], index: 1, kind: input, shape index: {}]   ;;  %s1396_s2 = inlined_call_operand.vmem [shape: bf16[32,8], index: 2, kind: input, shape index: {}]   ;;  %s1397_s3 = inlined_call_operand.vmem [shape: bf16[8,768], index: 3, kind: input, shape index: {}]   ;;  %s1398_s4 = inlined_call_operand.hbm [shape: bf16[768,128], index: 4, kind: input, shape index: {}]   ;;  %s1399_s5 = inlined_call_operand.hbm [shape: bf16[16,128], index: 5, kind: output, shape index: {0}]   ;;  %s1400_s6 = inlined_call_operand.hbm [shape: f32[1,8,128], index: 6, kind: output, shape index: {1}]  }
   0x1   :  { %13 = vsyncpa [#allocation4], 0 }
   0x2   :  { %14 = vsyncpa [#allocation7], 0  ;;  %s1246_s21 = smov [#allocation2]  }
   0x3   :  { %s28_s22 = sshll.u32 %s1246_s21, 4  ;;  %s29_s22 = int_to_ptr.vmem [resolvable:$true] %s28_s22 }
   0x4   :  { %s1188_s23 = scalar_lea.vmem %s29_s22, 6144  ;;  %p1193_p1 = scmp.lt.s32.totalorder %s29_s22, %s29_s22 }
   0x5   :  { %p1189_p0 = scmp.ne.s32.totalorder %s29_s22, %s1188_s23  ;;  %p1194_p2 = scmp.lt.s32.totalorder %s1188_s23, %s1188_s23 }
   0x7   :  { %p1195_p3 = por %p1194_p2, %p1193_p1 }
   0x9   :  { %p1196_p4 = pnand %p1195_p3, %p1189_p0 }
   0xb   :  { %1199 = shalt.err (!%p1196_p4)
}
   0xc   :  { %s1247_s24 = smov 64   ;;  %s1248_s25 = smov 4  }
   0xd   :  { %34 = dma.hbm_to_vmem [thread:$0]  %s1398_s4, 6144, %s29_s22, [#allocation3], %s1247_s24, %s1247_s24, %s1248_s25  }
   0xe   :  { %1240 = dma.done.wait [#allocation3], 6144  }
   0xf   :  { %1241 = vsyncadd [#allocation3], 4294961152  ;;  %v1249_v0 = vmov 0.0   ;;  %vm1250_vm0 = vmmov 0   ;;  %v1111_v1 = vld [vmem:[%s1396_s2 + $0x8] sm:$0xff]   ;;  %v1112_v2 = vld [vmem:[%s1396_s2] sm:$0xff]  }
  0x10   :  { %1089 = vmatprep.subr.bf16.mxu0 %v1249_v0  ;;  %1093 = vmatprep.mubr.msk.bf16.mxu0 %vm1250_vm0, %v1249_v0  ;;  %vm62_vm1 = vcmask 261120   ;;  %v1113_v3 = vld [vmem:[%s1394_s0] sm:$0xff]   ;;  %vm132_vm2 = vcmask 1043456   ;;  %v111_v8 = vld [vmem:[%s1397_s3 + $0x8] sm:$0xff]  ;;  %v1251_v9 = vmov 0   ;;  %v112_v15 = vld [vmem:[%s1397_s3 + $0x10] sm:$0xff] }
  0x11   :  { %1090 = vmatpush3.bf16.msra.mxu0 %v1111_v1  ;;  %v110_v4 = vld [vmem:[%s1397_s3] sm:$0xff]  ;;  %v954_v10 = vcombine.high %v111_v8, %v111_v8  ;;  %1110 = vset.pattern.permute.xlu1 %v1251_v9  ;;  %v953_v13 = vcombine.low %v111_v8, %v111_v8  ;;  %vm128_vm3 = vcmask 64512   ;;  %v956_v21 = vcombine.high %v112_v15, %v112_v15  ;;  %v1120_v24 = vld [vmem:[#allocation2 + $0x78] sm:$0xff]   ;;  %v1124_v28 = vld [vmem:[#allocation2 + $0x70] sm:$0xff]  }
  0x12   :  { %1091 = vmatprep.subr.bf16.mxu0 %v1249_v0  ;;  %v952_v5 = vcombine.high %v110_v4, %v110_v4  ;;  %v951_v6 = vcombine.low %v110_v4, %v110_v4  ;;  %1109 = vset.pattern.permute.xlu0 %v1251_v9  ;;  %v955_v22 = vcombine.low %v112_v15, %v112_v15  ;;  %v1121_v25 = vld [vmem:[#allocation2 + $0x38] sm:$0xff]   ;;  %v1126_v29 = vld [vmem:[#allocation2 + $0xf0] sm:$0xff]   ;;  %v1130_v4 = vld [vmem:[#allocation2 + $0xe8] sm:$0xff]   ;;  %vm900_vm9 = vcmask 7168  }
  0x13   :  { %v140_v20 = vsel %vm132_vm2, %v953_v13, 0  ;;  %v1122_v26 = vld [vmem:[#allocation2 + $0xf8] sm:$0xff]   ;;  %1023 = vmatprep.subr.bf16.mxu1 %v1120_v24  ;;  %v1125_v30 = vld [vmem:[#allocation2 + $0x30] sm:$0xff]   ;;  %v1134_v8 = vld [vmem:[#allocation2 + $0xe0] sm:$0xff]  }
  0x14   :  { %v134_v7 = vsel %vm132_vm2, %v951_v6, 0  ;;  %v146_v23 = vsel %vm132_vm2, %v955_v22, 0  ;;  %v1123_v27 = vld [vmem:[#allocation2 + $0xb8] sm:$0xff]   ;;  %1024 = vmatpush3.bf16.msra.mxu1 %v1121_v25  ;;  %v1127_v1 = vld [vmem:[#allocation2 + $0xb0] sm:$0xff]   ;;  %v1132_v6 = vld [vmem:[#allocation2 + $0x60] sm:$0xff]  }
  0x15   :  { %1092 = vmatpush3.bf16.msra.mxu0 %v1112_v2  ;;  %1025 = vmatprep.subr.bf16.mxu1 %v1124_v28  ;;  %v1128_v2 = vld [vmem:[#allocation2 + $0x68] sm:$0xff]   ;;  %v1139_v13 = vld [vmem:[#allocation2 + $0x98] sm:$0xff]   ;;  %v1141_v15 = vld [vmem:[#allocation2 + $0x10] sm:$0xff]  }
  0x16   :  { %957 = vmatprep.subr.msk.bf16.mxu0 %vm132_vm2, %v952_v5  ;;  %v1131_v5 = vld [vmem:[#allocation2 + $0xa8] sm:$0xff]   ;;  %v1148_v22 = vld [vmem:[#allocation2 + $0x40] sm:$0xff]  }
  0x17   :  { %v1150_v24 = vld [vmem:[#allocation2 + $0xc0] sm:$0xff]  }
  0x18   :  { %1094 = vmatmul.mubr.msk.bf16.vlgmr.msra.gmra.mxu0 %vm62_vm1, %v1113_v3  ;;  %1026 = vmatpush3.bf16.msra.mxu1 %v1125_v30  ;;  %v1129_v3 = vld [vmem:[#allocation2 + $0x28] sm:$0xff]   ;;  %v1151_v25 = vld [vmem:[#allocation2 + $0x80] sm:$0xff]  }
  0x19   :  { %166 = vmatpush1.bf16.msra.mxu0 %v134_v7  ;;  %183 = vmatprep.mubr.bf16.mxu0 %v1251_v9  ;;  %v1133_v7 = vld [vmem:[#allocation2 + $0x20] sm:$0xff]  }
  0x1a   :  { %959 = vmatprep.subr.msk.bf16.mxu0 %vm132_vm2, %v954_v10  ;;  %1027 = vmatprep.subr.bf16.mxu1 %v1128_v2  ;;  %v1136_v10 = vld [vmem:[#allocation2 + $0x58] sm:$0xff]   ;;  %v1167_v2 = vld [vmem:[#allocation2 + $0x100] sm:$0xff]  }
  0x1c   :  { %1028 = vmatpush3.bf16.msra.mxu1 %v1129_v3 }
  0x1d   :  { %1029 = vmatprep.subr.bf16.mxu1 %v1132_v6 }
  0x20   :  { %1030 = vmatpush3.bf16.msra.mxu1 %v1133_v7 }
  0x21   :  { %1031 = vmatprep.subr.bf16.mxu1 %v1136_v10 }
  0xd8   :  { %v100_v11 = vpop.f32.mrf.mxu0 }
  0xd9   :  { %v107_v16 = vmax.f32 %v100_v11, 0.0  ;;  %v1137_v11 = vld [vmem:[#allocation2 + $0x18] sm:$0xff]  }
  0xda   :  { %v1095_v12 = vpop.f32.mrf.mxu0  ;;  %1032 = vmatpush3.bf16.msra.mxu1 %v1137_v11 }
  0xdb   :  { %v1138_v12 = vld [vmem:[#allocation2 + $0xd8] sm:$0xff]  }
  0xdc   :  { %v103_v14 = vpop.f32.mrf.mxu0 }
  0xdd   :  { %v108_v17 = vmax.f32 %v103_v14, 0.0  ;;  %v1140_v14 = vld [vmem:[#allocation2 + $0x50] sm:$0xff]  }
  0xde   :  { %v1096_v18 = vpop.f32.mrf.mxu0  ;;  %1033 = vmatprep.subr.bf16.mxu1 %v1140_v14 }
  0xdf   :  { %v109_v19 = vpack.c.bf16 %v108_v17, %v107_v16  ;;  %v1142_v16 = vld [vmem:[#allocation2 + $0xd0] sm:$0xff]   ;;  %1034 = vmatpush3.bf16.msra.mxu1 %v1141_v15  ;;  %v1144_v18 = vld [vmem:[#allocation2 + $0x48] sm:$0xff]  }
  0xe0   :  { %v1143_v17 = vld [vmem:[#allocation2 + $0x90] sm:$0xff]   ;;  %1035 = vmatprep.subr.bf16.mxu1 %v1144_v18 }
  0xe1   :  { %958 = vmatmul.mubr.msk.bf16.vlgmr.msra.gmra.mxu0 %vm128_vm3, %v109_v19 }
  0xe2   :  { %209 = vmatpush1.bf16.msra.mxu0 %v140_v20  ;;  %226 = vmatprep.mubr.bf16.mxu0 %v1251_v9  ;;  %v1146_v20 = vld [vmem:[#allocation2 + $0xc8] sm:$0xff]  }
  0xe3   :  { %961 = vmatprep.subr.msk.bf16.mxu0 %vm132_vm2, %v956_v21  ;;  %v1147_v21 = vld [vmem:[#allocation2 + $0x88] sm:$0xff]  }
  0xe9   :  { %960 = vmatmul.mubr.msk.bf16.vlgmr.msra.gmra.mxu0 %vm128_vm3, %v109_v19 }
  0xea   :  { %252 = vmatpush1.bf16.msra.mxu0 %v146_v23  ;;  %269 = vmatprep.mubr.bf16.mxu0 %v1251_v9  ;;  %v1135_v9 = vld [vmem:[#allocation2 + $0xa0] sm:$0xff]  }
  0xeb   :  { %1045 = vmatprep.subr.bf16.mxu0 %v1122_v26  ;;  %v1149_v23 = vld [vmem:[#allocation2] sm:$0xff]   ;;  %v1152_v26 = vld [vmem:[#allocation2 + $0x178] sm:$0xff]  }
  0xf1   :  { %962 = vmatmul.mubr.msk.bf16.vlgmr.msra.gmra.mxu0 %vm128_vm3, %v109_v19  ;;  %v1145_v19 = vld [vmem:[#allocation2 + $0x8] sm:$0xff]  }
  0xf2   :  { %1046 = vmatpush3.bf16.msra.mxu0 %v1123_v27  ;;  %1036 = vmatpush3.bf16.msra.mxu1 %v1145_v19 }
  0xf3   :  { %1047 = vmatprep.subr.bf16.mxu0 %v1126_v29  ;;  %1037 = vmatprep.subr.bf16.mxu1 %v1148_v22 }
  0xf6   :  { %1048 = vmatpush3.bf16.msra.mxu0 %v1127_v1  ;;  %1038 = vmatpush3.bf16.msra.mxu1 %v1149_v23  ;;  %v1166_v1 = vld [vmem:[#allocation2 + $0x140] sm:$0xff]  }
  0xf7   :  { %1049 = vmatprep.subr.bf16.mxu0 %v1130_v4  ;;  %1067 = vmatprep.subr.bf16.mxu1 %v1152_v26 }
  0xfa   :  { %1050 = vmatpush3.bf16.msra.mxu0 %v1131_v5 }
  0xfb   :  { %1051 = vmatprep.subr.bf16.mxu0 %v1134_v8 }
  0xfe   :  { %1052 = vmatpush3.bf16.msra.mxu0 %v1135_v9 }
  0xff   :  { %1053 = vmatprep.subr.bf16.mxu0 %v1138_v12 }
 0x102   :  { %1054 = vmatpush3.bf16.msra.mxu0 %v1139_v13  ;;  %v851_v13 = vlaneseq }
 0x103   :  { %1055 = vmatprep.subr.bf16.mxu0 %v1142_v16 }
 0x104   :  { %v852_v19 = vand.u32 127, %v851_v13 }
 0x106   :  { %1056 = vmatpush3.bf16.msra.mxu0 %v1143_v17  ;;  %vm853_vm4 = vcmp.lt.s32.totalorder %v852_v19, 16 }
 0x107   :  { %1057 = vmatprep.subr.bf16.mxu0 %v1146_v20 }
 0x10a   :  { %1058 = vmatpush3.bf16.msra.mxu0 %v1147_v21 }
 0x10b   :  { %1059 = vmatprep.subr.bf16.mxu0 %v1150_v24 }
 0x10e   :  { %1060 = vmatpush3.bf16.msra.mxu0 %v1151_v25 }
 0x1a1   :  { %v1319_v31 = vpop.f32.mrf.mxu0 }
 0x1a2   :  { %v280_v37 = vmul.f32 %v1319_v31, %v1319_v31 }
 0x1a3   :  { %v1321_v32 = vpop.f32.mrf.mxu0 }
 0x1a4   :  { %v281_v35 = vmul.f32 %v1321_v32, %v1321_v32 }
 0x1a5   :  { %v1323_v33 = vpop.f32.mrf.mxu0 }
 0x1a6   :  { %v292_v40 = vadd.f32 %v281_v35, %v280_v37  ;;  %v286_v43 = vmul.f32 %v1323_v33, %v1323_v33 }
 0x1a7   :  { %v1325_v34 = vpop.f32.mrf.mxu0 }
 0x1a8   :  { %v287_v41 = vmul.f32 %v1325_v34, %v1325_v34 }
 0x1a9   :  { %v1329_v36 = vpop.f32.mrf.mxu0 }
 0x1aa   :  { %v282_v38 = vmul.f32 %v1329_v36, %v1329_v36  ;;  %v299_v48 = vadd.f32 %v287_v41, %v286_v43 }
 0x1ab   :  { %v1335_v39 = vpop.f32.mrf.mxu0 }
 0x1ac   :  { %v293_v44 = vadd.f32 %v292_v40, %v282_v38  ;;  %v283_v45 = vmul.f32 %v1335_v39, %v1335_v39 }
 0x1ad   :  { %v1339_v42 = vpop.f32.mrf.mxu0 }
 0x1ae   :  { %v288_v46 = vmul.f32 %v1339_v42, %v1339_v42  ;;  %v294_v50 = vadd.f32 %v293_v44, %v283_v45 }
 0x1af   :  { %v1347_v47 = vpop.f32.mrf.mxu0 }
 0x1b0   :  { %v300_v51 = vadd.f32 %v299_v48, %v288_v46  ;;  %v289_v52 = vmul.f32 %v1347_v47, %v1347_v47 }
 0x1b1   :  { %v1349_v49 = vpop.f32.mrf.mxu0 }
 0x1b2   :  { %v284_v53 = vmul.f32 %v1349_v49, %v1349_v49  ;;  %v301_v58 = vadd.f32 %v300_v51, %v289_v52 }
 0x1b3   :  { %v1355_v54 = vpop.f32.mrf.mxu0 }
 0x1b4   :  { %v285_v55 = vmul.f32 %v1355_v54, %v1355_v54  ;;  %v295_v56 = vadd.f32 %v294_v50, %v284_v53 }
 0x1b5   :  { %v1359_v57 = vpop.f32.mrf.mxu0 }
 0x1b6   :  { %v290_v59 = vmul.f32 %v1359_v57, %v1359_v57  ;;  %v296_v60 = vadd.f32 %v295_v56, %v285_v55 }
 0x1b7   :  { %v1363_v61 = vpop.f32.mrf.mxu0 }
 0x1b8   :  { %v291_v62 = vmul.f32 %v1363_v61, %v1363_v61  ;;  %297 = vadd.xlane.f32.xlu0 %v296_v60  ;;  %v302_v63 = vadd.f32 %v301_v58, %v290_v59  ;;  %v1153_v58 = vld [vmem:[#allocation2 + $0x138] sm:$0xff]  }
 0x1b9   :  { %v1160_v59 = vld [vmem:[#allocation2 + $0x158] sm:$0xff]  }
 0x1ba   :  { %v303_v0 = vadd.f32 %v302_v63, %v291_v62  ;;  %v1161_v60 = vld [vmem:[#allocation2 + $0x118] sm:$0xff]   ;;  %v1163_v62 = vld [vmem:[#allocation2 + $0x110] sm:$0xff]   ;;  %v1164_v63 = vld [vmem:[#allocation2 + $0x148] sm:$0xff]  }
 0x1bc   :  { %304 = vadd.xlane.f32.xlu0 %v303_v0  ;;  %v1165_v0 = vld [vmem:[#allocation2 + $0x108] sm:$0xff]  }
 0x241   :  { %v298_v27 = vpop.xlane.xlu0 %297 }
 0x242   :  { %v306_v28 = vmax.f32 %v298_v27, 1e-24 }
 0x244   :  { %1168 = vrsqrt.f32 %v306_v28 }
 0x245   :  { %v305_v29 = vpop.xlane.xlu0 %304 }
 0x246   :  { %v307_v30 = vmax.f32 %v305_v29, 1e-24 }
 0x248   :  { %1170 = vrsqrt.f32 %v307_v30 }
 0x251   :  { %v1169_v35 = vpop.eup %1168 }
 0x252   :  { %v310_v37 = vmul.f32 4.6052, %v1169_v35 }
 0x254   :  { %v313_v41 = vmul.f32 %v310_v37, %v1321_v32  ;;  %v315_v43 = vmul.f32 %v310_v37, %v1335_v39  ;;  %v312_v44 = vmul.f32 %v310_v37, %v1319_v31  ;;  %v314_v45 = vmul.f32 %v310_v37, %v1329_v36  ;;  %v1154_v31 = vld [vmem:[#allocation2 + $0x170] sm:$0xff]  }
 0x255   :  { %v1171_v38 = vpop.eup %1170  ;;  %v317_v52 = vmul.f32 %v310_v37, %v1355_v54  ;;  %v1159_v54 = vld [vmem:[#allocation2 + $0x120] sm:$0xff]   ;;  %v316_v4 = vmul.f32 %v310_v37, %v1349_v49 }
 0x256   :  { %v311_v40 = vmul.f32 4.6052, %v1171_v38 }
 0x258   :  { %v319_v46 = vmul.f32 %v311_v40, %v1325_v34  ;;  %v321_v48 = vmul.f32 %v311_v40, %v1347_v47  ;;  %v318_v50 = vmul.f32 %v311_v40, %v1323_v33  ;;  %v320_v51 = vmul.f32 %v311_v40, %v1339_v42  ;;  %v1155_v33 = vld [vmem:[#allocation2 + $0x130] sm:$0xff]   ;;  %v1156_v34 = vld [vmem:[#allocation2 + $0x168] sm:$0xff]   ;;  %v1158_v47 = vld [vmem:[#allocation2 + $0x160] sm:$0xff]  }
 0x259   :  { %v323_v53 = vmul.f32 %v311_v40, %v1363_v61  ;;  %v1157_v42 = vld [vmem:[#allocation2 + $0x128] sm:$0xff]   ;;  %v1162_v61 = vld [vmem:[#allocation2 + $0x150] sm:$0xff]   ;;  %v322_v3 = vmul.f32 %v311_v40, %v1359_v57 }
 0x25a   :  { %v325_v55 = vpack.c.bf16 %v319_v46, %v313_v41  ;;  %v327_v32 = vpack.c.bf16 %v321_v48, %v315_v43  ;;  %v324_v56 = vpack.c.bf16 %v318_v50, %v312_v44  ;;  %v326_v39 = vpack.c.bf16 %v320_v51, %v314_v45  ;;  %v848_v50 = vld [vmem:[%s1395_s1 + $0x8] sm:$0xff]  ;;  %v847_v51 = vld [vmem:[%s1395_s1] sm:$0xff]  ;;  %s1252_s1 = smov [#allocation5]  }
 0x25b   :  { %v329_v36 = vpack.c.bf16 %v323_v53, %v317_v52  ;;  %v328_v5 = vpack.c.bf16 %v322_v3, %v316_v4  ;;  %vm896_vm7 = vcmp.ge.s32.totalorder %v847_v51, 0  ;;  %vm897_vm8 = vcmp.ge.s32.totalorder %v848_v50, 0  ;;  %s921_s16 = sshll.u32 %s1252_s1, 4  ;;  %s922_s16 = int_to_ptr.vmem [resolvable:$true] %s921_s16 }
 0x25c   :  { %746 = vmatprep.mubr.bf16.mxu1 %v325_v55  ;;  %787 = vmatprep.mubr.bf16.mxu0 %v327_v32  ;;  %s1200_s17 = scalar_lea.vmem %s922_s16, 128  ;;  %p1205_p6 = scmp.lt.s32.totalorder %s922_s16, %s922_s16 }
 0x25d   :  { %747 = vmatmul.mubr.bf16.vlgmr.msra.gmra.mxu1 %v324_v56  ;;  %788 = vmatmul.mubr.bf16.vlgmr.msra.gmra.mxu0 %v326_v39  ;;  %p1201_p5 = scmp.ne.s32.totalorder %s922_s16, %s1200_s17  ;;  %p1206_p7 = scmp.lt.s32.totalorder %s1200_s17, %s1200_s17 }
 0x25e   :  { %1068 = vmatpush3.bf16.msra.mxu1 %v1153_v58  ;;  %828 = vmatprep.mubr.bf16.mxu1 %v329_v36 }
 0x25f   :  { %1069 = vmatprep.subr.bf16.mxu1 %v1154_v31  ;;  %p1207_p8 = por %p1206_p7, %p1205_p6 }
 0x261   :  { %p1208_p9 = pnand %p1207_p8, %p1201_p5 }
 0x262   :  { %1070 = vmatpush3.bf16.msra.mxu1 %v1155_v33 }
 0x263   :  { %1071 = vmatprep.subr.bf16.mxu1 %v1156_v34 }
 0x266   :  { %1072 = vmatpush3.bf16.msra.mxu1 %v1157_v42 }
 0x267   :  { %1073 = vmatprep.subr.bf16.mxu1 %v1158_v47 }
 0x26a   :  { %1074 = vmatpush3.bf16.msra.mxu1 %v1159_v54 }
 0x26b   :  { %1075 = vmatprep.subr.bf16.mxu1 %v1160_v59 }
 0x26e   :  { %1076 = vmatpush3.bf16.msra.mxu1 %v1161_v60 }
 0x26f   :  { %1077 = vmatprep.subr.bf16.mxu1 %v1162_v61 }
 0x272   :  { %1078 = vmatpush3.bf16.msra.mxu1 %v1163_v62 }
 0x273   :  { %1079 = vmatprep.subr.bf16.mxu1 %v1164_v63 }
 0x276   :  { %1080 = vmatpush3.bf16.msra.mxu1 %v1165_v0 }
 0x277   :  { %1081 = vmatprep.subr.bf16.mxu1 %v1166_v1 }
 0x27a   :  { %1082 = vmatpush3.bf16.msra.mxu1 %v1167_v2 }
 0x27d   :  { %829 = vmatmul.mubr.bf16.vlgmr.msra.gmra.mxu1 %v328_v5 }
 0x31d   :  { %v1039_v6 = vpop.f32.mrf.mxu1  ;;  %v1061_v7 = vpop.f32.mrf.mxu0 }
 0x31f   :  { %v1040_v8 = vpop.f32.mrf.mxu1  ;;  %v1062_v9 = vpop.f32.mrf.mxu0 }
 0x320   :  { %v1041_v14 = vadd.f32 %v1040_v8, %v1039_v6  ;;  %v1063_v15 = vadd.f32 %v1062_v9, %v1061_v7 }
 0x321   :  { %v1042_v10 = vpop.f32.mrf.mxu1  ;;  %v1064_v11 = vpop.f32.mrf.mxu0 }
 0x322   :  { %v790_v57 = vadd.f32 %v1063_v15, %v1041_v14 }
 0x323   :  { %v1043_v12 = vpop.f32.mrf.mxu1  ;;  %v1065_v16 = vpop.f32.mrf.mxu0 }
 0x324   :  { %v1044_v20 = vadd.f32 %v1043_v12, %v1042_v10  ;;  %v1066_v49 = vadd.f32 %v1065_v16, %v1064_v11 }
 0x326   :  { %v793_v25 = vadd.f32 %v1066_v49, %v1044_v20 }
 0x33d   :  { %v1083_v17 = vpop.f32.mrf.mxu1 }
 0x33f   :  { %v1084_v18 = vpop.f32.mrf.mxu1 }
 0x340   :  { %v1085_v21 = vadd.f32 %v1084_v18, %v1083_v17 }
 0x341   :  { %v1086_v22 = vpop.f32.mrf.mxu1 }
 0x342   :  { %v831_v23 = vadd.f32 %v1085_v21, %v790_v57 }
 0x343   :  { %v1087_v24 = vpop.f32.mrf.mxu1 }
 0x344   :  { %v1088_v26 = vadd.f32 %v1087_v24, %v1086_v22  ;;  %v849_v27 = vmul.f32 14.285714, %v831_v23 }
 0x346   :  { %v834_v28 = vadd.f32 %v1088_v26, %v793_v25  ;;  %v854_v29 = vsel %vm853_vm4, %v849_v27, -1e+30 }
 0x347   :  { %856 = vmax.xlane.f32.xlu1 %v854_v29 }
 0x348   :  { %v850_v30 = vmul.f32 14.285714, %v834_v28  ;;  %v1018_v35 = vpack.c.bf16 %v834_v28, %v831_v23 }
 0x34a   :  { %v855_v37 = vsel %vm853_vm4, %v850_v30, -1e+30  ;;  %1019 = vst [vmem:[#allocation5] sm:$0xff] %v1018_v35  }
 0x34b   :  { %858 = vmax.xlane.f32.xlu1 %v855_v37 }
 0x3d0   :  { %v857_v38 = vpop.xlane.xlu1 %856 }
 0x3d1   :  { %v860_v40 = vsub.f32 %v854_v29, %v857_v38 }
 0x3d3   :  { %v862_v41 = vmul.f32 1.442695, %v860_v40 }
 0x3d4   :  { %v859_v43 = vpop.xlane.xlu1 %858 }
 0x3d5   :  { %1172 = vpow2.f32 %v862_v41  ;;  %v861_v44 = vsub.f32 %v855_v37, %v859_v43 }
 0x3d7   :  { %v864_v45 = vmul.f32 1.442695, %v861_v44 }
 0x3d9   :  { %1174 = vpow2.f32 %v864_v45 }
 0x3e2   :  { %v1173_v46 = vpop.eup %1172 }
 0x3e3   :  { %866 = vadd.xlane.f32.xlu0 %v1173_v46 }
 0x3e6   :  { %v1175_v48 = vpop.eup %1174 }
 0x3e7   :  { %868 = vadd.xlane.f32.xlu1 %v1175_v48 }
 0x3f8   :  { %880 = vperm.xlu1 %1110, %v848_v50  }
 0x3f9   :  { %877 = vperm.xlu0 %1109, %v847_v51  }
 0x46c   :  { %v867_v52 = vpop.xlane.xlu0 %866 }
 0x46d   :  { %1176 = vlog2.f32 %v867_v52 }
 0x470   :  { %v869_v53 = vpop.xlane.xlu1 %868 }
 0x471   :  { %1178 = vlog2.f32 %v869_v53 }
 0x474   :  { %v878_v55 = vpop.permute.xlu0 %877  ;;  %v881_v32 = vpop.permute.xlu1 %880 }
 0x475   :  { %vm882_vm5 = vcmp.eq.s32.totalorder %v852_v19, %v878_v55  ;;  %vm883_vm6 = vcmp.eq.s32.totalorder %v852_v19, %v881_v32 }
 0x476   :  { %v884_v56 = vsel %vm882_vm5, %v854_v29, 0.0  ;;  %v885_v39 = vsel %vm883_vm6, %v855_v37, 0.0 }
 0x477   :  { %v886_v58 = vadd.f32 %v885_v39, %v884_v56 }
 0x479   :  { %887 = vadd.xlane.f32.xlu1 %v886_v58 }
 0x47a   :  { %v1177_v31 = vpop.eup %1176 }
 0x47b   :  { %v871_v36 = vmul.f32 0.6931472, %v1177_v31 }
 0x47d   :  { %v874_v33 = vadd.f32 %v871_v36, %v857_v38 }
 0x47e   :  { %v1179_v34 = vpop.eup %1178 }
 0x47f   :  { %v873_v42 = vmul.f32 0.6931472, %v1179_v34  ;;  %v898_v54 = vsel %vm896_vm7, %v874_v33, 0.0 }
 0x480   :  { %v901_v60 = vsel %vm900_vm9, %v898_v54, 0.0 }
 0x481   :  { %v875_v47 = vadd.f32 %v873_v42, %v859_v43 }
 0x483   :  { %v899_v59 = vsel %vm897_vm8, %v875_v47, 0.0 }
 0x484   :  { %v902_v61 = vsel %vm900_vm9, %v899_v59, 0.0 }
 0x485   :  { %v903_v62 = vadd.f32 %v902_v61, %v901_v60 }
 0x487   :  { %904 = vadd.xlane.f32.xlu0 %v903_v62 }
 0x488   :  { %1211 = shalt.err (!%p1208_p9)
}
 0x489   :  { %927 = dma.vmem_to_hbm [thread:$0]  %s922_s16, 128, %s1399_s5, [#allocation4], %s1247_s24, %s1247_s24, %s1248_s25  }
 0x48a   :  { %s1253_s21 = smov [#allocation6]  }
 0x48b   :  { %s934_s22 = sshll.u32 %s1253_s21, 4  ;;  %s935_s22 = int_to_ptr.vmem [resolvable:$true] %s934_s22 }
 0x48c   :  { %s1220_s24 = scalar_lea.vmem %s935_s22, 128  ;;  %p1225_p11 = scmp.lt.s32.totalorder %s935_s22, %s935_s22 }
 0x48d   :  { %p1221_p10 = scmp.ne.s32.totalorder %s935_s22, %s1220_s24  ;;  %p1226_p12 = scmp.lt.s32.totalorder %s1220_s24, %s1220_s24 }
 0x48f   :  { %p1227_p13 = por %p1226_p12, %p1225_p11 }
 0x491   :  { %p1228_p0 = pnand %p1227_p13, %p1221_p10 }
 0x502   :  { %v888_v63 = vpop.xlane.xlu1 %887 }
 0x503   :  { %v889_v0 = vrot.slane %v888_v63, 4 }
 0x505   :  { %v890_v1 = vadd.f32 %v889_v0, %v888_v63 }
 0x507   :  { %v891_v2 = vrot.slane %v890_v1, 2 }
 0x509   :  { %v892_v3 = vadd.f32 %v891_v2, %v890_v1 }
 0x50b   :  { %v893_v4 = vrot.slane %v892_v3, 1 }
 0x50d   :  { %v894_v5 = vadd.f32 %v893_v4, %v892_v3 }
 0x50f   :  { %1097 = vpush %v894_v5 }
 0x510   :  { %v905_v6 = vpop.xlane.xlu0 %904 }
 0x511   :  { %v906_v7 = vrot.slane %v905_v6, 4 }
 0x513   :  { %v907_v8 = vadd.f32 %v906_v7, %v905_v6 }
 0x515   :  { %v908_v9 = vrot.slane %v907_v8, 2 }
 0x517   :  { %v909_v10 = vadd.f32 %v908_v9, %v907_v8 }
 0x519   :  { %v910_v11 = vrot.slane %v909_v10, 1 }
 0x51b   :  { %v911_v12 = vadd.f32 %v910_v11, %v909_v10 }
 0x51d   :  { %1099 = vpush %v911_v12 }
 0x540   :  { %s1098_s20 = spop %1097 }
 0x54e   :  { %s1100_s5 = spop %1099 }
 0x54f   :  { %s913_s23 = ssub.f32 %s1100_s5, %s1098_s20 }
 0x551   :  { %v914_v13 = vstv %s913_s23 }
 0x552   :  { %915 = vst [vmem:[#allocation6] sm:$0xff] %v914_v13 }
 0x553   :  { %1231 = shalt.err (!%p1228_p0)
}
 0x554   :  { %937 = dma.vmem_to_hbm [thread:$0]  %s935_s22, 128, %s1400_s6, [#allocation7]  }
 0x555   :  { %1242 = dma.done.wait [#allocation4], 128  }
 0x556   :  { %1243 = vsyncadd [#allocation4], 4294967168 }
 0x557   :  { %1244 = dma.done.wait [#allocation7], 128  }
 0x558   :  { %1245 = vsyncadd [#allocation7], 4294967168 }
 0x559   :  { %944 = vsyncpa [#allocation3], 1 }
 0x55a   :  { %945 = vsyncpa [#allocation4], 1 }
 0x55b   :  { %946 = vsyncpa [#allocation7], 1 }

// kernel: tpu_custom_call.1
= control target key start
LH: loop header
LB: loop body
LE: loop exit
PB: predicated region body
PF: predicated region fallthrough
CT: control target
= control target key end

     0   :  { %12 = vsyncpa [#allocation3], 0  ;;  %s1394_s0 = inlined_call_operand.vmem [shape: bf16[16,32], index: 0, kind: input, shape index: {}]   ;;  %s1395_s1 = inlined_call_operand.vmem [shape: s32[16,1], index: 1, kind: input, shape index: {}]   ;;  %s1396_s2 = inlined_call_operand.vmem [shape: bf16[32,8], index: 2, kind: input, shape index: {}]   ;;  %s1397_s3 = inlined_call_operand.vmem [shape: bf16[8,768], index: 3, kind: input, shape index: {}]   ;;  %s1398_s4 = inlined_call_operand.hbm [shape: bf16[768,128], index: 4, kind: input, shape index: {}]   ;;  %s1399_s5 = inlined_call_operand.hbm [shape: bf16[16,128], index: 5, kind: output, shape index: {0}]   ;;  %s1400_s6 = inlined_call_operand.hbm [shape: f32[1,8,128], index: 6, kind: output, shape index: {1}]  }
   0x1   :  { %13 = vsyncpa [#allocation4], 0 }
   0x2   :  { %14 = vsyncpa [#allocation7], 0  ;;  %s1246_s21 = smov [#allocation2]  }
   0x3   :  { %s28_s22 = sshll.u32 %s1246_s21, 4  ;;  %s29_s22 = int_to_ptr.vmem [resolvable:$true] %s28_s22 }
   0x4   :  { %s1188_s23 = scalar_lea.vmem %s29_s22, 6144  ;;  %p1193_p1 = scmp.lt.s32.totalorder %s29_s22, %s29_s22 }
   0x5   :  { %p1189_p0 = scmp.ne.s32.totalorder %s29_s22, %s1188_s23  ;;  %p1194_p2 = scmp.lt.s32.totalorder %s1188_s23, %s1188_s23 }
   0x7   :  { %p1195_p3 = por %p1194_p2, %p1193_p1 }
   0x9   :  { %p1196_p4 = pnand %p1195_p3, %p1189_p0 }
   0xb   :  { %1199 = shalt.err (!%p1196_p4)
}
   0xc   :  { %s1247_s24 = smov 64   ;;  %s1248_s25 = smov 4  }
   0xd   :  { %34 = dma.hbm_to_vmem [thread:$0]  %s1398_s4, 6144, %s29_s22, [#allocation3], %s1247_s24, %s1247_s24, %s1248_s25  }
   0xe   :  { %1240 = dma.done.wait [#allocation3], 6144  }
   0xf   :  { %1241 = vsyncadd [#allocation3], 4294961152  ;;  %v1249_v0 = vmov 0.0   ;;  %vm1250_vm0 = vmmov 0   ;;  %v1111_v1 = vld [vmem:[%s1396_s2 + $0x8] sm:$0xff]   ;;  %v1112_v2 = vld [vmem:[%s1396_s2] sm:$0xff]  }
  0x10   :  { %1089 = vmatprep.subr.bf16.mxu0 %v1249_v0  ;;  %1093 = vmatprep.mubr.msk.bf16.mxu0 %vm1250_vm0, %v1249_v0  ;;  %vm62_vm1 = vcmask 261120   ;;  %v1113_v3 = vld [vmem:[%s1394_s0] sm:$0xff]   ;;  %vm132_vm2 = vcmask 1043456   ;;  %v111_v8 = vld [vmem:[%s1397_s3 + $0x8] sm:$0xff]  ;;  %v1251_v9 = vmov 0   ;;  %v112_v15 = vld [vmem:[%s1397_s3 + $0x10] sm:$0xff] }
  0x11   :  { %1090 = vmatpush3.bf16.msra.mxu0 %v1111_v1  ;;  %v110_v4 = vld [vmem:[%s1397_s3] sm:$0xff]  ;;  %v954_v10 = vcombine.high %v111_v8, %v111_v8  ;;  %1110 = vset.pattern.permute.xlu1 %v1251_v9  ;;  %v953_v13 = vcombine.low %v111_v8, %v111_v8  ;;  %vm128_vm3 = vcmask 64512   ;;  %v956_v21 = vcombine.high %v112_v15, %v112_v15  ;;  %v1120_v24 = vld [vmem:[#allocation2 + $0x78] sm:$0xff]   ;;  %v1124_v28 = vld [vmem:[#allocation2 + $0x70] sm:$0xff]  }
  0x12   :  { %1091 = vmatprep.subr.bf16.mxu0 %v1249_v0  ;;  %v952_v5 = vcombine.high %v110_v4, %v110_v4  ;;  %v951_v6 = vcombine.low %v110_v4, %v110_v4  ;;  %1109 = vset.pattern.permute.xlu0 %v1251_v9  ;;  %v955_v22 = vcombine.low %v112_v15, %v112_v15  ;;  %v1121_v25 = vld [vmem:[#allocation2 + $0x38] sm:$0xff]   ;;  %v1126_v29 = vld [vmem:[#allocation2 + $0xf0] sm:$0xff]   ;;  %v1130_v4 = vld [vmem:[#allocation2 + $0xe8] sm:$0xff]   ;;  %vm900_vm9 = vcmask 7168  }
  0x13   :  { %v140_v20 = vsel %vm132_vm2, %v953_v13, 0  ;;  %v1122_v26 = vld [vmem:[#allocation2 + $0xf8] sm:$0xff]   ;;  %1023 = vmatprep.subr.bf16.mxu1 %v1120_v24  ;;  %v1125_v30 = vld [vmem:[#allocation2 + $0x30] sm:$0xff]   ;;  %v1134_v8 = vld [vmem:[#allocation2 + $0xe0] sm:$0xff]  }
  0x14   :  { %v134_v7 = vsel %vm132_vm2, %v951_v6, 0  ;;  %v146_v23 = vsel %vm132_vm2, %v955_v22, 0  ;;  %v1123_v27 = vld [vmem:[#allocation2 + $0xb8] sm:$0xff]   ;;  %1024 = vmatpush3.bf16.msra.mxu1 %v1121_v25  ;;  %v1127_v1 = vld [vmem:[#allocation2 + $0xb0] sm:$0xff]   ;;  %v1132_v6 = vld [vmem:[#allocation2 + $0x60] sm:$0xff]  }
  0x15   :  { %1092 = vmatpush3.bf16.msra.mxu0 %v1112_v2  ;;  %1025 = vmatprep.subr.bf16.mxu1 %v1124_v28  ;;  %v1128_v2 = vld [vmem:[#allocation2 + $0x68] sm:$0xff]   ;;  %v1139_v13 = vld [vmem:[#allocation2 + $0x98] sm:$0xff]   ;;  %v1141_v15 = vld [vmem:[#allocation2 + $0x10] sm:$0xff]  }
  0x16   :  { %957 = vmatprep.subr.msk.bf16.mxu0 %vm132_vm2, %v952_v5  ;;  %v1131_v5 = vld [vmem:[#allocation2 + $0xa8] sm:$0xff]   ;;  %v1148_v22 = vld [vmem:[#allocation2 + $0x40] sm:$0xff]  }
  0x17   :  { %v1150_v24 = vld [vmem:[#allocation2 + $0xc0] sm:$0xff]  }
  0x18   :  { %1094 = vmatmul.mubr.msk.bf16.vlgmr.msra.gmra.mxu0 %vm62_vm1, %v1113_v3  ;;  %1026 = vmatpush3.bf16.msra.mxu1 %v1125_v30  ;;  %v1129_v3 = vld [vmem:[#allocation2 + $0x28] sm:$0xff]   ;;  %v1151_v25 = vld [vmem:[#allocation2 + $0x80] sm:$0xff]  }
  0x19   :  { %166 = vmatpush1.bf16.msra.mxu0 %v134_v7  ;;  %183 = vmatprep.mubr.bf16.mxu0 %v1251_v9  ;;  %v1133_v7 = vld [vmem:[#allocation2 + $0x20] sm:$0xff]  }
  0x1a   :  { %959 = vmatprep.subr.msk.bf16.mxu0 %vm132_vm2, %v954_v10  ;;  %1027 = vmatprep.subr.bf16.mxu1 %v1128_v2  ;;  %v1136_v10 = vld [vmem:[#allocation2 + $0x58] sm:$0xff]   ;;  %v1167_v2 = vld [vmem:[#allocation2 + $0x100] sm:$0xff]  }
  0x1c   :  { %1028 = vmatpush3.bf16.msra.mxu1 %v1129_v3 }
  0x1d   :  { %1029 = vmatprep.subr.bf16.mxu1 %v1132_v6 }
  0x20   :  { %1030 = vmatpush3.bf16.msra.mxu1 %v1133_v7 }
  0x21   :  { %1031 = vmatprep.subr.bf16.mxu1 %v1136_v10 }
  0xd8   :  { %v100_v11 = vpop.f32.mrf.mxu0 }
  0xd9   :  { %v107_v16 = vmax.f32 %v100_v11, 0.0  ;;  %v1137_v11 = vld [vmem:[#allocation2 + $0x18] sm:$0xff]  }
  0xda   :  { %v1095_v12 = vpop.f32.mrf.mxu0  ;;  %1032 = vmatpush3.bf16.msra.mxu1 %v1137_v11 }
  0xdb   :  { %v1138_v12 = vld [vmem:[#allocation2 + $0xd8] sm:$0xff]  }
  0xdc   :  { %v103_v14 = vpop.f32.mrf.mxu0 }
  0xdd   :  { %v108_v17 = vmax.f32 %v103_v14, 0.0  ;;  %v1140_v14 = vld [vmem:[#allocation2 + $0x50] sm:$0xff]  }
  0xde   :  { %v1096_v18 = vpop.f32.mrf.mxu0  ;;  %1033 = vmatprep.subr.bf16.mxu1 %v1140_v14 }
  0xdf   :  { %v109_v19 = vpack.c.bf16 %v108_v17, %v107_v16  ;;  %v1142_v16 = vld [vmem:[#allocation2 + $0xd0] sm:$0xff]   ;;  %1034 = vmatpush3.bf16.msra.mxu1 %v1141_v15  ;;  %v1144_v18 = vld [vmem:[#allocation2 + $0x48] sm:$0xff]  }
  0xe0   :  { %v1143_v17 = vld [vmem:[#allocation2 + $0x90] sm:$0xff]   ;;  %1035 = vmatprep.subr.bf16.mxu1 %v1144_v18 }
  0xe1   :  { %958 = vmatmul.mubr.msk.bf16.vlgmr.msra.gmra.mxu0 %vm128_vm3, %v109_v19 }
  0xe2   :  { %209 = vmatpush1.bf16.msra.mxu0 %v140_v20  ;;  %226 = vmatprep.mubr.bf16.mxu0 %v1251_v9  ;;  %v1146_v20 = vld [vmem:[#allocation2 + $0xc8] sm:$0xff]  }
  0xe3   :  { %961 = vmatprep.subr.msk.bf16.mxu0 %vm132_vm2, %v956_v21  ;;  %v1147_v21 = vld [vmem:[#allocation2 + $0x88] sm:$0xff]  }
  0xe9   :  { %960 = vmatmul.mubr.msk.bf16.vlgmr.msra.gmra.mxu0 %vm128_vm3, %v109_v19 }
  0xea   :  { %252 = vmatpush1.bf16.msra.mxu0 %v146_v23  ;;  %269 = vmatprep.mubr.bf16.mxu0 %v1251_v9  ;;  %v1135_v9 = vld [vmem:[#allocation2 + $0xa0] sm:$0xff]  }
  0xeb   :  { %1045 = vmatprep.subr.bf16.mxu0 %v1122_v26  ;;  %v1149_v23 = vld [vmem:[#allocation2] sm:$0xff]   ;;  %v1152_v26 = vld [vmem:[#allocation2 + $0x178] sm:$0xff]  }
  0xf1   :  { %962 = vmatmul.mubr.msk.bf16.vlgmr.msra.gmra.mxu0 %vm128_vm3, %v109_v19  ;;  %v1145_v19 = vld [vmem:[#allocation2 + $0x8] sm:$0xff]  }
  0xf2   :  { %1046 = vmatpush3.bf16.msra.mxu0 %v1123_v27  ;;  %1036 = vmatpush3.bf16.msra.mxu1 %v1145_v19 }
  0xf3   :  { %1047 = vmatprep.subr.bf16.mxu0 %v1126_v29  ;;  %1037 = vmatprep.subr.bf16.mxu1 %v1148_v22 }
  0xf6   :  { %1048 = vmatpush3.bf16.msra.mxu0 %v1127_v1  ;;  %1038 = vmatpush3.bf16.msra.mxu1 %v1149_v23  ;;  %v1166_v1 = vld [vmem:[#allocation2 + $0x140] sm:$0xff]  }
  0xf7   :  { %1049 = vmatprep.subr.bf16.mxu0 %v1130_v4  ;;  %1067 = vmatprep.subr.bf16.mxu1 %v1152_v26 }
  0xfa   :  { %1050 = vmatpush3.bf16.msra.mxu0 %v1131_v5 }
  0xfb   :  { %1051 = vmatprep.subr.bf16.mxu0 %v1134_v8 }
  0xfe   :  { %1052 = vmatpush3.bf16.msra.mxu0 %v1135_v9 }
  0xff   :  { %1053 = vmatprep.subr.bf16.mxu0 %v1138_v12 }
 0x102   :  { %1054 = vmatpush3.bf16.msra.mxu0 %v1139_v13  ;;  %v851_v13 = vlaneseq }
 0x103   :  { %1055 = vmatprep.subr.bf16.mxu0 %v1142_v16 }
 0x104   :  { %v852_v19 = vand.u32 127, %v851_v13 }
 0x106   :  { %1056 = vmatpush3.bf16.msra.mxu0 %v1143_v17  ;;  %vm853_vm4 = vcmp.lt.s32.totalorder %v852_v19, 16 }
 0x107   :  { %1057 = vmatprep.subr.bf16.mxu0 %v1146_v20 }
 0x10a   :  { %1058 = vmatpush3.bf16.msra.mxu0 %v1147_v21 }
 0x10b   :  { %1059 = vmatprep.subr.bf16.mxu0 %v1150_v24 }
 0x10e   :  { %1060 = vmatpush3.bf16.msra.mxu0 %v1151_v25 }
 0x1a1   :  { %v1319_v31 = vpop.f32.mrf.mxu0 }
 0x1a2   :  { %v280_v37 = vmul.f32 %v1319_v31, %v1319_v31 }
 0x1a3   :  { %v1321_v32 = vpop.f32.mrf.mxu0 }
 0x1a4   :  { %v281_v35 = vmul.f32 %v1321_v32, %v1321_v32 }
 0x1a5   :  { %v1323_v33 = vpop.f32.mrf.mxu0 }
 0x1a6   :  { %v292_v40 = vadd.f32 %v281_v35, %v280_v37  ;;  %v286_v43 = vmul.f32 %v1323_v33, %v1323_v33 }
 0x1a7   :  { %v1325_v34 = vpop.f32.mrf.mxu0 }
 0x1a8   :  { %v287_v41 = vmul.f32 %v1325_v34, %v1325_v34 }
 0x1a9   :  { %v1329_v36 = vpop.f32.mrf.mxu0 }
 0x1aa   :  { %v282_v38 = vmul.f32 %v1329_v36, %v1329_v36  ;;  %v299_v48 = vadd.f32 %v287_v41, %v286_v43 }
 0x1ab   :  { %v1335_v39 = vpop.f32.mrf.mxu0 }
 0x1ac   :  { %v293_v44 = vadd.f32 %v292_v40, %v282_v38  ;;  %v283_v45 = vmul.f32 %v1335_v39, %v1335_v39 }
 0x1ad   :  { %v1339_v42 = vpop.f32.mrf.mxu0 }
 0x1ae   :  { %v288_v46 = vmul.f32 %v1339_v42, %v1339_v42  ;;  %v294_v50 = vadd.f32 %v293_v44, %v283_v45 }
 0x1af   :  { %v1347_v47 = vpop.f32.mrf.mxu0 }
 0x1b0   :  { %v300_v51 = vadd.f32 %v299_v48, %v288_v46  ;;  %v289_v52 = vmul.f32 %v1347_v47, %v1347_v47 }
 0x1b1   :  { %v1349_v49 = vpop.f32.mrf.mxu0 }
 0x1b2   :  { %v284_v53 = vmul.f32 %v1349_v49, %v1349_v49  ;;  %v301_v58 = vadd.f32 %v300_v51, %v289_v52 }
 0x1b3   :  { %v1355_v54 = vpop.f32.mrf.mxu0 }
 0x1b4   :  { %v285_v55 = vmul.f32 %v1355_v54, %v1355_v54  ;;  %v295_v56 = vadd.f32 %v294_v50, %v284_v53 }
 0x1b5   :  { %v1359_v57 = vpop.f32.mrf.mxu0 }
 0x1b6   :  { %v290_v59 = vmul.f32 %v1359_v57, %v1359_v57  ;;  %v296_v60 = vadd.f32 %v295_v56, %v285_v55 }
 0x1b7   :  { %v1363_v61 = vpop.f32.mrf.mxu0 }
 0x1b8   :  { %v291_v62 = vmul.f32 %v1363_v61, %v1363_v61  ;;  %297 = vadd.xlane.f32.xlu0 %v296_v60  ;;  %v302_v63 = vadd.f32 %v301_v58, %v290_v59  ;;  %v1153_v58 = vld [vmem:[#allocation2 + $0x138] sm:$0xff]  }
 0x1b9   :  { %v1160_v59 = vld [vmem:[#allocation2 + $0x158] sm:$0xff]  }
 0x1ba   :  { %v303_v0 = vadd.f32 %v302_v63, %v291_v62  ;;  %v1161_v60 = vld [vmem:[#allocation2 + $0x118] sm:$0xff]   ;;  %v1163_v62 = vld [vmem:[#allocation2 + $0x110] sm:$0xff]   ;;  %v1164_v63 = vld [vmem:[#allocation2 + $0x148] sm:$0xff]  }
 0x1bc   :  { %304 = vadd.xlane.f32.xlu0 %v303_v0  ;;  %v1165_v0 = vld [vmem:[#allocation2 + $0x108] sm:$0xff]  }
 0x241   :  { %v298_v27 = vpop.xlane.xlu0 %297 }
 0x242   :  { %v306_v28 = vmax.f32 %v298_v27, 1e-24 }
 0x244   :  { %1168 = vrsqrt.f32 %v306_v28 }
 0x245   :  { %v305_v29 = vpop.xlane.xlu0 %304 }
 0x246   :  { %v307_v30 = vmax.f32 %v305_v29, 1e-24 }
 0x248   :  { %1170 = vrsqrt.f32 %v307_v30 }
 0x251   :  { %v1169_v35 = vpop.eup %1168 }
 0x252   :  { %v310_v37 = vmul.f32 4.6052, %v1169_v35 }
 0x254   :  { %v313_v41 = vmul.f32 %v310_v37, %v1321_v32  ;;  %v315_v43 = vmul.f32 %v310_v37, %v1335_v39  ;;  %v312_v44 = vmul.f32 %v310_v37, %v1319_v31  ;;  %v314_v45 = vmul.f32 %v310_v37, %v1329_v36  ;;  %v1154_v31 = vld [vmem:[#allocation2 + $0x170] sm:$0xff]  }
 0x255   :  { %v1171_v38 = vpop.eup %1170  ;;  %v317_v52 = vmul.f32 %v310_v37, %v1355_v54  ;;  %v1159_v54 = vld [vmem:[#allocation2 + $0x120] sm:$0xff]   ;;  %v316_v4 = vmul.f32 %v310_v37, %v1349_v49 }
 0x256   :  { %v311_v40 = vmul.f32 4.6052, %v1171_v38 }
 0x258   :  { %v319_v46 = vmul.f32 %v311_v40, %v1325_v34  ;;  %v321_v48 = vmul.f32 %v311_v40, %v1347_v47  ;;  %v318_v50 = vmul.f32 %v311_v40, %v1323_v33  ;;  %v320_v51 = vmul.f32 %v311_v40, %v1339_v42  ;;  %v1155_v33 = vld [vmem:[#allocation2 + $0x130] sm:$0xff]   ;;  %v1156_v34 = vld [vmem:[#allocation2 + $0x168] sm:$0xff]   ;;  %v1158_v47 = vld [vmem:[#allocation2 + $0x160] sm:$0xff]  }
 0x259   :  { %v323_v53 = vmul.f32 %v311_v40, %v1363_v61  ;;  %v1157_v42 = vld [vmem:[#allocation2 + $0x128] sm:$0xff]   ;;  %v1162_v61 = vld [vmem:[#allocation2 + $0x150] sm:$0xff]   ;;  %v322_v3 = vmul.f32 %v311_v40, %v1359_v57 }
 0x25a   :  { %v325_v55 = vpack.c.bf16 %v319_v46, %v313_v41  ;;  %v327_v32 = vpack.c.bf16 %v321_v48, %v315_v43  ;;  %v324_v56 = vpack.c.bf16 %v318_v50, %v312_v44  ;;  %v326_v39 = vpack.c.bf16 %v320_v51, %v314_v45  ;;  %v848_v50 = vld [vmem:[%s1395_s1 + $0x8] sm:$0xff]  ;;  %v847_v51 = vld [vmem:[%s1395_s1] sm:$0xff]  ;;  %s1252_s1 = smov [#allocation5]  }
 0x25b   :  { %v329_v36 = vpack.c.bf16 %v323_v53, %v317_v52  ;;  %v328_v5 = vpack.c.bf16 %v322_v3, %v316_v4  ;;  %vm896_vm7 = vcmp.ge.s32.totalorder %v847_v51, 0  ;;  %vm897_vm8 = vcmp.ge.s32.totalorder %v848_v50, 0  ;;  %s921_s16 = sshll.u32 %s1252_s1, 4  ;;  %s922_s16 = int_to_ptr.vmem [resolvable:$true] %s921_s16 }
 0x25c   :  { %746 = vmatprep.mubr.bf16.mxu1 %v325_v55  ;;  %787 = vmatprep.mubr.bf16.mxu0 %v327_v32  ;;  %s1200_s17 = scalar_lea.vmem %s922_s16, 128  ;;  %p1205_p6 = scmp.lt.s32.totalorder %s922_s16, %s922_s16 }
 0x25d   :  { %747 = vmatmul.mubr.bf16.vlgmr.msra.gmra.mxu1 %v324_v56  ;;  %788 = vmatmul.mubr.bf16.vlgmr.msra.gmra.mxu0 %v326_v39  ;;  %p1201_p5 = scmp.ne.s32.totalorder %s922_s16, %s1200_s17  ;;  %p1206_p7 = scmp.lt.s32.totalorder %s1200_s17, %s1200_s17 }
 0x25e   :  { %1068 = vmatpush3.bf16.msra.mxu1 %v1153_v58  ;;  %828 = vmatprep.mubr.bf16.mxu1 %v329_v36 }
 0x25f   :  { %1069 = vmatprep.subr.bf16.mxu1 %v1154_v31  ;;  %p1207_p8 = por %p1206_p7, %p1205_p6 }
 0x261   :  { %p1208_p9 = pnand %p1207_p8, %p1201_p5 }
 0x262   :  { %1070 = vmatpush3.bf16.msra.mxu1 %v1155_v33 }
 0x263   :  { %1071 = vmatprep.subr.bf16.mxu1 %v1156_v34 }
 0x266   :  { %1072 = vmatpush3.bf16.msra.mxu1 %v1157_v42 }
 0x267   :  { %1073 = vmatprep.subr.bf16.mxu1 %v1158_v47 }
 0x26a   :  { %1074 = vmatpush3.bf16.msra.mxu1 %v1159_v54 }
 0x26b   :  { %1075 = vmatprep.subr.bf16.mxu1 %v1160_v59 }
 0x26e   :  { %1076 = vmatpush3.bf16.msra.mxu1 %v1161_v60 }
 0x26f   :  { %1077 = vmatprep.subr.bf16.mxu1 %v1162_v61 }
 0x272   :  { %1078 = vmatpush3.bf16.msra.mxu1 %v1163_v62 }
 0x273   :  { %1079 = vmatprep.subr.bf16.mxu1 %v1164_v63 }
 0x276   :  { %1080 = vmatpush3.bf16.msra.mxu1 %v1165_v0 }
 0x277   :  { %1081 = vmatprep.subr.bf16.mxu1 %v1166_v1 }
 0x27a   :  { %1082 = vmatpush3.bf16.msra.mxu1 %v1167_v2 }
 0x27d   :  { %829 = vmatmul.mubr.bf16.vlgmr.msra.gmra.mxu1 %v328_v5 }
 0x31d   :  { %v1039_v6 = vpop.f32.mrf.mxu1  ;;  %v1061_v7 = vpop.f32.mrf.mxu0 }
 0x31f   :  { %v1040_v8 = vpop.f32.mrf.mxu1  ;;  %v1062_v9 = vpop.f32.mrf.mxu0 }
 0x320   :  { %v1041_v14 = vadd.f32 %v1040_v8, %v1039_v6  ;;  %v1063_v15 = vadd.f32 %v1062_v9, %v1061_v7 }
 0x321   :  { %v1042_v10 = vpop.f32.mrf.mxu1  ;;  %v1064_v11 = vpop.f32.mrf.mxu0 }
 0x322   :  { %v790_v57 = vadd.f32 %v1063_v15, %v1041_v14 }
 0x323   :  { %v1043_v12 = vpop.f32.mrf.mxu1  ;;  %v1065_v16 = vpop.f32.mrf.mxu0 }
 0x324   :  { %v1044_v20 = vadd.f32 %v1043_v12, %v1042_v10  ;;  %v1066_v49 = vadd.f32 %v1065_v16, %v1064_v11 }
 0x326   :  { %v793_v25 = vadd.f32 %v1066_v49, %v1044_v20 }
 0x33d   :  { %v1083_v17 = vpop.f32.mrf.mxu1 }
 0x33f   :  { %v1084_v18 = vpop.f32.mrf.mxu1 }
 0x340   :  { %v1085_v21 = vadd.f32 %v1084_v18, %v1083_v17 }
 0x341   :  { %v1086_v22 = vpop.f32.mrf.mxu1 }
 0x342   :  { %v831_v23 = vadd.f32 %v1085_v21, %v790_v57 }
 0x343   :  { %v1087_v24 = vpop.f32.mrf.mxu1 }
 0x344   :  { %v1088_v26 = vadd.f32 %v1087_v24, %v1086_v22  ;;  %v849_v27 = vmul.f32 14.285714, %v831_v23 }
 0x346   :  { %v834_v28 = vadd.f32 %v1088_v26, %v793_v25  ;;  %v854_v29 = vsel %vm853_vm4, %v849_v27, -1e+30 }
 0x347   :  { %856 = vmax.xlane.f32.xlu1 %v854_v29 }
 0x348   :  { %v850_v30 = vmul.f32 14.285714, %v834_v28  ;;  %v1018_v35 = vpack.c.bf16 %v834_v28, %v831_v23 }
 0x34a   :  { %v855_v37 = vsel %vm853_vm4, %v850_v30, -1e+30  ;;  %1019 = vst [vmem:[#allocation5] sm:$0xff] %v1018_v35  }
 0x34b   :  { %858 = vmax.xlane.f32.xlu1 %v855_v37 }
 0x3d0   :  { %v857_v38 = vpop.xlane.xlu1 %856 }
 0x3d1   :  { %v860_v40 = vsub.f32 %v854_v29, %v857_v38 }
 0x3d3   :  { %v862_v41 = vmul.f32 1.442695, %v860_v40 }
 0x3d4   :  { %v859_v43 = vpop.xlane.xlu1 %858 }
 0x3d5   :  { %1172 = vpow2.f32 %v862_v41  ;;  %v861_v44 = vsub.f32 %v855_v37, %v859_v43 }
 0x3d7   :  { %v864_v45 = vmul.f32 1.442695, %v861_v44 }
 0x3d9   :  { %1174 = vpow2.f32 %v864_v45 }
 0x3e2   :  { %v1173_v46 = vpop.eup %1172 }
 0x3e3   :  { %866 = vadd.xlane.f32.xlu0 %v1173_v46 }
 0x3e6   :  { %v1175_v48 = vpop.eup %1174 }
 0x3e7   :  { %868 = vadd.xlane.f32.xlu1 %v1175_v48 }
 0x3f8   :  { %880 = vperm.xlu1 %1110, %v848_v50  }
 0x3f9   :  { %877 = vperm.xlu0 %1109, %v847_v51  }
 0x46c   :  { %v867_v52 = vpop.xlane.xlu0 %866 }
 0x46d   :  { %1176 = vlog2.f32 %v867_v52 }
 0x470   :  { %v869_v53 = vpop.xlane.xlu1 %868 }
 0x471   :  { %1178 = vlog2.f32 %v869_v53 }
 0x474   :  { %v878_v55 = vpop.permute.xlu0 %877  ;;  %v881_v32 = vpop.permute.xlu1 %880 }
 0x475   :  { %vm882_vm5 = vcmp.eq.s32.totalorder %v852_v19, %v878_v55  ;;  %vm883_vm6 = vcmp.eq.s32.totalorder %v852_v19, %v881_v32 }
 0x476   :  { %v884_v56 = vsel %vm882_vm5, %v854_v29, 0.0  ;;  %v885_v39 = vsel %vm883_vm6, %v855_v37, 0.0 }
 0x477   :  { %v886_v58 = vadd.f32 %v885_v39, %v884_v56 }
 0x479   :  { %887 = vadd.xlane.f32.xlu1 %v886_v58 }
 0x47a   :  { %v1177_v31 = vpop.eup %1176 }
 0x47b   :  { %v871_v36 = vmul.f32 0.6931472, %v1177_v31 }
 0x47d   :  { %v874_v33 = vadd.f32 %v871_v36, %v857_v38 }
 0x47e   :  { %v1179_v34 = vpop.eup %1178 }
 0x47f   :  { %v873_v42 = vmul.f32 0.6931472, %v1179_v34  ;;  %v898_v54 = vsel %vm896_vm7, %v874_v33, 0.0 }
 0x480   :  { %v901_v60 = vsel %vm900_vm9, %v898_v54, 0.0 }
 0x481   :  { %v875_v47 = vadd.f32 %v873_v42, %v859_v43 }
 0x483   :  { %v899_v59 = vsel %vm897_vm8, %v875_v47, 0.0 }
 0x484   :  { %v902_v61 = vsel %vm900_vm9, %v899_v59, 0.0 }
 0x485   :  { %v903_v62 = vadd.f32 %v902_v61, %v901_v60 }
 0x487   :  { %904 = vadd.xlane.f32.xlu0 %v903_v62 }
 0x488   :  { %1211 = shalt.err (!%p1208_p9)
}
 0x489   :  { %927 = dma.vmem_to_hbm [thread:$0]  %s922_s16, 128, %s1399_s5, [#allocation4], %s1247_s24, %s1247_s24, %s1248_s25  }
 0x48a   :  { %s1253_s21 = smov [#allocation6]  }
 0x48b   :  { %s934_s22 = sshll.u32 %s1253_s21, 4  ;;  %s935_s22 = int_to_ptr.vmem [resolvable:$true] %s934_s22 }
 0x48c   :  { %s1220_s24 = scalar_lea.vmem %s935_s22, 128  ;;  %p1225_p11 = scmp.lt.s32.totalorder %s935_s22, %s935_s22 }
 0x48d   :  { %p1221_p10 = scmp.ne.s32.totalorder %s935_s22, %s1220_s24  ;;  %p1226_p12 = scmp.lt.s32.totalorder %s1220_s24, %s1220_s24 }
 0x48f   :  { %p1227_p13 = por %p1226_p12, %p1225_p11 }
 0x491   :  { %p1228_p0 = pnand %p1227_p13, %p1221_p10 }
 0x502   :  { %v888_v63 = vpop.xlane.xlu1 %887 }
 0x503   :  { %v889_v0 = vrot.slane %v888_v63, 4 }
 0x505   :  { %v890_v1 = vadd.f32 %v889_v0, %v888_v63 }
 0x507   :  { %v891_v2 = vrot.slane %v890_v1, 2 }
 0x509   :  { %v892_v3 = vadd.f32 %v891_v2, %v890_v1 }
 0x50b   :  { %v893_v4 = vrot.slane %v892_v3, 1 }
 0x50d   :  { %v894_v5 = vadd.f32 %v893_v4, %v892_v3 }
 0x50f   :  { %1097 = vpush %v894_v5 }
 0x510   :  { %v905_v6 = vpop.xlane.xlu0 %904 }
 0x511   :  { %v906_v7 = vrot.slane %v905_v6, 4 }
 0x513   :  { %v907_v8 = vadd.f32 %v906_v7, %v905_v6 }
 0x515   :  { %v908_v9 = vrot.slane %v907_v8, 2 }
 0x517   :  { %v909_v10 = vadd.f32 %v908_v9, %v907_v8 }
 0x519   :  { %v910_v11 = vrot.slane %v909_v10, 1 }
 0x51b   :  { %v911_v12 = vadd.f32 %v910_v11, %v909_v10 }
 0x51d   :  { %1099 = vpush %v911_v12 }
 0x540   :  { %s1098_s20 = spop %1097 }
 0x54e   :  { %s1100_s5 = spop %1099 }
 0x54f   :  { %s913_s23 = ssub.f32 %s1100_s5, %s1098_s20 }
 0x551   :  { %v914_v13 = vstv %s913_s23 }
 0x552   :  { %915 = vst [vmem:[#allocation6] sm:$0xff] %v914_v13 }
 0x553   :  { %1231 = shalt.err (!%p1228_p0)
}
 0x554   :  { %937 = dma.vmem_to_hbm [thread:$0]  %s935_s22, 128, %s1400_s6, [#allocation7]  }
 0x555   :  { %1242 = dma.done.wait [#allocation4], 128  }
 0x556   :  { %1243 = vsyncadd [#allocation4], 4294967168 }
 0x557   :  { %1244 = dma.done.wait [#allocation7], 128  }
 0x558   :  { %1245 = vsyncadd [#allocation7], 4294967168 }
 0x559   :  { %944 = vsyncpa [#allocation3], 1 }
 0x55a   :  { %945 = vsyncpa [#allocation4], 1 }
 0x55b   :  { %946 = vsyncpa [#allocation7], 1 }

</bundles_post_ra>
